<compile_context>
chip_gen: v7x
topology: tpu7x:2x2x1
jax: 0.10.0
libtpu: 0.0.40
codegen_flags: <defaults>
</compile_context>

<pallas_src>
import jax
import jax.numpy as jnp
import numpy as np
from jax import lax
from jax.experimental import pallas as pl
from jax.experimental.pallas import tpu as pltpu

C_IN = 3
GROUPS = 3
OUT_PER_GROUP = 3
C_OUT = GROUPS * OUT_PER_GROUP
KH = KW = 3
PAD = 1  # stride=1, padding=1  ->  "same" spatial size


def _round_up(x, m):
    return (x + m - 1) // m * m


def _pick_batch_block(n, hw, vmem_budget_bytes=8 * 1024 * 1024):
    """Largest divisor of n keeping per-step VMEM small and >= 2 grid steps (v7x: 2 TCs)."""
    # Rough f32 bytes per image per step: double-buffered in/out blocks (channel dims pad to
    # 8 / 16 sublanes) + halo scratch.
    per_img = 4 * hw * (2 * 8 + 2 * 16 + 8)
    cap = max(1, vmem_budget_bytes // max(per_img, 1))
    if n >= 2:
        cap = min(cap, n // 2)      # keep at least 2 grid steps for megacore sharding
    cap = max(1, min(cap, n))
    best = 1
    for d in range(1, cap + 1):
        if n % d == 0:
            best = d
    return best


def conv_transpose_tanh(x_nchw, weight, *, batch_block=None):
    """tanh(conv_transpose2d(x, weight, stride=1, padding=1, groups=GROUPS)), NCHW in/out.

    x_nchw : (N, C_IN, H, W)
    weight : (C_IN, OUT_PER_GROUP, KH, KW)   (PyTorch ConvTranspose2d layout)
    returns: (N, C_OUT, H, W) float32
    """
    N, C, H, W = x_nchw.shape
    assert C == C_IN
    HW = H * W

    # A stride-1 transposed conv with padding 1 is a "same" correlation with the spatially
    # flipped kernel.  Flatten to [co, a, b] so the kernel indexes it with one SMEM scalar.
    w_flip = weight[:, :, ::-1, ::-1].astype(jnp.float32)
    w_flat = w_flip.reshape(C_OUT * KH * KW)

    # Free reshape (no HBM pass): the flattened spatial axis becomes the lane dimension.
    x_flat = x_nchw.reshape(N, C_IN, HW).astype(jnp.float32)

    B = batch_block if batch_block is not None else _pick_batch_block(N, HW)
    assert N % B == 0, "batch_block must divide N"

    # Halo scratch: interior of width HW at lane offset PADL (128-aligned store); >= W+1 zero
    # lanes on each side emulate the 1-pixel spatial zero padding for the vertical taps.
    PADL = _round_up(W + 1, 128)
    HWP = 2 * PADL + HW

    def kernel(w_ref, x_ref, o_ref, xpad_ref):
        # w_ref   : (C_OUT*KH*KW,) f32 SMEM (scalar-prefetched), flattened flipped kernel
        # x_ref   : (B, C_IN, HW)  f32 VMEM
        # o_ref   : (B, C_OUT, HW) f32 VMEM
        # xpad_ref: (B, C_IN, HWP) f32 VMEM scratch (zero halo + staged input interior)
        xpad_ref[...] = jnp.zeros_like(xpad_ref)        # re-zero halos every step (megacore-safe)
        xpad_ref[:, :, PADL:PADL + HW] = x_ref[...]     # lane-aligned interior store

        # Column masks for horizontal taps.  Row-out-of-bounds reads that are column-valid
        # always land in the zero halo, so no row masks are needed.
        col = lax.broadcasted_iota(jnp.int32, (1, HW), 1) % W
        keep_l = col != 0            # dx = -1 invalid at the leftmost column
        keep_r = col != (W - 1)      # dx = +1 invalid at the rightmost column

        for g in range(GROUPS):
            # 9 shifted taps of this group's single input channel, as lane-offset slices of
            # the halo-padded scratch (VMEM-only; no extra HBM traffic).
            taps = []
            for a in range(KH):
                dy = a - 1
                for b in range(KW):
                    dx = b - 1
                    start = PADL + dy * W + dx
                    t = xpad_ref[:, g, start:start + HW]          # (B, HW)
                    if dx == -1:
                        t = jnp.where(keep_l, t, 0.0)
                    elif dx == 1:
                        t = jnp.where(keep_r, t, 0.0)
                    taps.append(t)
            for j in range(OUT_PER_GROUP):
                co = g * OUT_PER_GROUP + j
                base = co * (KH * KW)
                # Pairwise (tree) reduction of the 9 weighted taps -> log-depth VALU chain.
                terms = [taps[t] * w_ref[base + t] for t in range(KH * KW)]
                while len(terms) > 1:
                    nxt = [terms[i] + terms[i + 1] for i in range(0, len(terms) - 1, 2)]
                    if len(terms) % 2:
                        nxt.append(terms[-1])
                    terms = nxt
                o_ref[:, co, :] = jnp.tanh(terms[0])              # tanh on the EUP, lane-dense store

    cost = pl.CostEstimate(
        flops=2 * N * C_OUT * HW * KH * KW,
        transcendentals=N * C_OUT * HW,
        bytes_accessed=4 * (N * C_IN * HW + N * C_OUT * HW + C_OUT * KH * KW),
    )

    # TODO(synk): for very large images, additionally tile the flattened spatial axis (halo of
    # W+1 lanes per side) so a single block stays inside v7x's smaller scoped VMEM.
    out_flat = pl.pallas_call(
        kernel,
        out_shape=jax.ShapeDtypeStruct((N, C_OUT, HW), jnp.float32),
        grid_spec=pltpu.PrefetchScalarGridSpec(
            num_scalar_prefetch=1,
            grid=(N // B,),
            in_specs=[pl.BlockSpec((B, C_IN, HW), lambda i, w: (i, 0, 0))],
            out_specs=pl.BlockSpec((B, C_OUT, HW), lambda i, w: (i, 0, 0)),
            scratch_shapes=[pltpu.VMEM((B, C_IN, HWP), jnp.float32)],
        ),
        compiler_params=pltpu.CompilerParams(dimension_semantics=("parallel",)),
        cost_estimate=cost,
    )(w_flat, x_flat)

    return out_flat.reshape(N, C_OUT, H, W)


def reference_conv_transpose_tanh(x, w):
    """Independent scatter-form reference of grouped ConvTranspose2d (stride=1, pad=1)."""
    N, C, H, W = x.shape
    acc = np.zeros((N, C_OUT, H + 2 * PAD, W + 2 * PAD), np.float64)
    for g in range(GROUPS):
        for j in range(OUT_PER_GROUP):
            co = g * OUT_PER_GROUP + j
            for kh in range(KH):
                for kw in range(KW):
                    acc[:, co, kh:kh + H, kw:kw + W] += x[:, g] * w[g, j, kh, kw]
    out = acc[:, :, PAD:PAD + H, PAD:PAD + W]
    return np.tanh(out).astype(np.float32)


if __name__ == "__main__":
    key = jax.random.PRNGKey(0)
    kx, kw = jax.random.split(key)
    # Small NCHW input consistent with the module (3 input channels).
    x = jax.random.normal(kx, (4, C_IN, 16, 16), dtype=jnp.float32)
    # Deterministic synthetic weight in PyTorch ConvTranspose2d layout:
    # (in_channels, out_channels // groups, KH, KW).
    w = 0.1 * jax.random.normal(kw, (C_IN, OUT_PER_GROUP, KH, KW), dtype=jnp.float32)

    out = conv_transpose_tanh(x, w)
    out = jax.block_until_ready(out)

    ref = reference_conv_transpose_tanh(np.asarray(x), np.asarray(w))
    np.testing.assert_allclose(np.asarray(out), ref, rtol=1e-4, atol=1e-5)
    print("KERNEL_OK")
</pallas_src>

<mosaic_0001>
module attributes {stable_mosaic.version = 11 : i64} {
  func.func @kernel(%arg0: i32, %arg1: memref<81xf32, #tpu.memory_space<smem>>, %arg2: memref<2x3x256xf32, #tpu.memory_space<vmem>>, %arg3: memref<2x9x256xf32, #tpu.memory_space<vmem>>, %arg4: memref<2x3x512xf32, #tpu.memory_space<vmem>>) attributes {dimension_semantics = [#tpu.dimension_semantics<parallel>], iteration_bounds = array<i64: 2>, scalar_prefetch = 1 : i64, scratch_operands = 1 : i64, tpu.core_type = #tpu.core_type<tc>, window_params = [{transform_indices = @transform_0, window_bounds = array<i64: 2, 3, 256>}, {transform_indices = @transform_1, window_bounds = array<i64: 2, 9, 256>}]} {
    %cst = arith.constant 0.000000e+00 : f32
    %0 = vector.broadcast %cst : f32 to vector<2x3x512xf32>
    %c0 = arith.constant 0 : index
    %c0_0 = arith.constant 0 : index
    %c0_1 = arith.constant 0 : index
    %1 = vector.load %arg4[%c0, %c0_0, %c0_1] : memref<2x3x512xf32, #tpu.memory_space<vmem>>, vector<2x3x512xf32>
    tpu.vector_store %arg4[%c0, %c0_0, %c0_1], %0 {strides = array<i32>} : memref<2x3x512xf32, #tpu.memory_space<vmem>>, vector<2x3x512xf32>,
    %c0_2 = arith.constant 0 : index
    %c0_3 = arith.constant 0 : index
    %c0_4 = arith.constant 0 : index
    %2 = vector.load %arg2[%c0_2, %c0_3, %c0_4] : memref<2x3x256xf32, #tpu.memory_space<vmem>>, vector<2x3x256xf32>
    %c0_5 = arith.constant 0 : index
    %c0_6 = arith.constant 0 : index
    %c128 = arith.constant 128 : index
    %3 = vector.load %arg4[%c0_5, %c0_6, %c128] : memref<2x3x512xf32, #tpu.memory_space<vmem>>, vector<2x3x256xf32>
    tpu.vector_store %arg4[%c0_5, %c0_6, %c128], %2 {strides = array<i32>} : memref<2x3x512xf32, #tpu.memory_space<vmem>>, vector<2x3x256xf32>,
    %4 = tpu.iota {dimensions = array<i32: 1>} : vector<1x256xi32>
    %c16_i32 = arith.constant 16 : i32
    %c0_i32 = arith.constant 0 : i32
    %5 = arith.cmpi eq, %c16_i32, %c0_i32 : i32
    %c1_i32 = arith.constant 1 : i32
    %6 = arith.select %5, %c1_i32, %c16_i32 : i32
    %7 = vector.broadcast %6 : i32 to vector<1x256xi32>
    %8 = arith.remsi %4, %7 : vector<1x256xi32>
    %c0_i32_7 = arith.constant 0 : i32
    %9 = vector.broadcast %c0_i32_7 : i32 to vector<1x256xi32>
    %10 = arith.cmpi ne, %8, %9 : vector<1x256xi32>
    %c0_i32_8 = arith.constant 0 : i32
    %11 = vector.broadcast %c0_i32_8 : i32 to vector<1x256xi32>
    %12 = arith.cmpi slt, %8, %11 : vector<1x256xi32>
    %c0_i32_9 = arith.constant 0 : i32
    %13 = arith.cmpi slt, %6, %c0_i32_9 : i32
    %14 = vector.broadcast %13 : i1 to vector<1x256xi1>
    %15 = vector.broadcast %14 : vector<1x256xi1> to vector<1x256xi1>
    %16 = arith.xori %12, %15 : vector<1x256xi1>
    %17 = arith.andi %16, %10 : vector<1x256xi1>
    %18 = vector.broadcast %6 : i32 to vector<1x256xi32>
    %19 = arith.addi %8, %18 : vector<1x256xi32>
    %20 = arith.select %17, %19, %8 : vector<1x256xi1>, vector<1x256xi32>
    %c0_i32_10 = arith.constant 0 : i32
    %21 = vector.broadcast %c0_i32_10 : i32 to vector<1x256xi32>
    %22 = arith.cmpi ne, %20, %21 : vector<1x256xi32>
    %c15_i32 = arith.constant 15 : i32
    %23 = vector.broadcast %c15_i32 : i32 to vector<1x256xi32>
    %24 = arith.cmpi ne, %20, %23 : vector<1x256xi32>
    %c0_11 = arith.constant 0 : index
    %c0_12 = arith.constant 0 : index
    %c111 = arith.constant 111 : index
    %25 = vector.load %arg4[%c0_11, %c0_12, %c111] : memref<2x3x512xf32, #tpu.memory_space<vmem>>, vector<2x1x256xf32>
    %26 = vector.shape_cast %25 : vector<2x1x256xf32> to vector<2x256xf32>
    %cst_13 = arith.constant 0.000000e+00 : f32
    %27 = vector.shape_cast %22 : vector<1x256xi1> to vector<1x256xi1>
    %28 = vector.broadcast %27 : vector<1x256xi1> to vector<2x256xi1>
    %29 = vector.broadcast %cst_13 : f32 to vector<2x256xf32>
    %30 = arith.select %28, %26, %29 : vector<2x256xi1>, vector<2x256xf32>
    %c0_14 = arith.constant 0 : index
    %c0_15 = arith.constant 0 : index
    %c112 = arith.constant 112 : index
    %31 = vector.load %arg4[%c0_14, %c0_15, %c112] : memref<2x3x512xf32, #tpu.memory_space<vmem>>, vector<2x1x256xf32>
    %32 = vector.shape_cast %31 : vector<2x1x256xf32> to vector<2x256xf32>
    %c0_16 = arith.constant 0 : index
    %c0_17 = arith.constant 0 : index
    %c113 = arith.constant 113 : index
    %33 = vector.load %arg4[%c0_16, %c0_17, %c113] : memref<2x3x512xf32, #tpu.memory_space<vmem>>, vector<2x1x256xf32>
    %34 = vector.shape_cast %33 : vector<2x1x256xf32> to vector<2x256xf32>
    %cst_18 = arith.constant 0.000000e+00 : f32
    %35 = vector.shape_cast %24 : vector<1x256xi1> to vector<1x256xi1>
    %36 = vector.broadcast %35 : vector<1x256xi1> to vector<2x256xi1>
    %37 = vector.broadcast %cst_18 : f32 to vector<2x256xf32>
    %38 = arith.select %36, %34, %37 : vector<2x256xi1>, vector<2x256xf32>
    %c0_19 = arith.constant 0 : index
    %c0_20 = arith.constant 0 : index
    %c127 = arith.constant 127 : index
    %39 = vector.load %arg4[%c0_19, %c0_20, %c127] : memref<2x3x512xf32, #tpu.memory_space<vmem>>, vector<2x1x256xf32>
    %40 = vector.shape_cast %39 : vector<2x1x256xf32> to vector<2x256xf32>
    %cst_21 = arith.constant 0.000000e+00 : f32
    %41 = vector.shape_cast %22 : vector<1x256xi1> to vector<1x256xi1>
    %42 = vector.broadcast %41 : vector<1x256xi1> to vector<2x256xi1>
    %43 = vector.broadcast %cst_21 : f32 to vector<2x256xf32>
    %44 = arith.select %42, %40, %43 : vector<2x256xi1>, vector<2x256xf32>
    %c0_22 = arith.constant 0 : index
    %c0_23 = arith.constant 0 : index
    %c128_24 = arith.constant 128 : index
    %45 = vector.load %arg4[%c0_22, %c0_23, %c128_24] : memref<2x3x512xf32, #tpu.memory_space<vmem>>, vector<2x1x256xf32>
    %46 = vector.shape_cast %45 : vector<2x1x256xf32> to vector<2x256xf32>
    %c0_25 = arith.constant 0 : index
    %c0_26 = arith.constant 0 : index
    %c129 = arith.constant 129 : index
    %47 = vector.load %arg4[%c0_25, %c0_26, %c129] : memref<2x3x512xf32, #tpu.memory_space<vmem>>, vector<2x1x256xf32>
    %48 = vector.shape_cast %47 : vector<2x1x256xf32> to vector<2x256xf32>
    %cst_27 = arith.constant 0.000000e+00 : f32
    %49 = vector.shape_cast %24 : vector<1x256xi1> to vector<1x256xi1>
    %50 = vector.broadcast %49 : vector<1x256xi1> to vector<2x256xi1>
    %51 = vector.broadcast %cst_27 : f32 to vector<2x256xf32>
    %52 = arith.select %50, %48, %51 : vector<2x256xi1>, vector<2x256xf32>
    %c0_28 = arith.constant 0 : index
    %c0_29 = arith.constant 0 : index
    %c143 = arith.constant 143 : index
    %53 = vector.load %arg4[%c0_28, %c0_29, %c143] : memref<2x3x512xf32, #tpu.memory_space<vmem>>, vector<2x1x256xf32>
    %54 = vector.shape_cast %53 : vector<2x1x256xf32> to vector<2x256xf32>
    %cst_30 = arith.constant 0.000000e+00 : f32
    %55 = vector.shape_cast %22 : vector<1x256xi1> to vector<1x256xi1>
    %56 = vector.broadcast %55 : vector<1x256xi1> to vector<2x256xi1>
    %57 = vector.broadcast %cst_30 : f32 to vector<2x256xf32>
    %58 = arith.select %56, %54, %57 : vector<2x256xi1>, vector<2x256xf32>
    %c0_31 = arith.constant 0 : index
    %c0_32 = arith.constant 0 : index
    %c144 = arith.constant 144 : index
    %59 = vector.load %arg4[%c0_31, %c0_32, %c144] : memref<2x3x512xf32, #tpu.memory_space<vmem>>, vector<2x1x256xf32>
    %60 = vector.shape_cast %59 : vector<2x1x256xf32> to vector<2x256xf32>
    %c0_33 = arith.constant 0 : index
    %c0_34 = arith.constant 0 : index
    %c145 = arith.constant 145 : index
    %61 = vector.load %arg4[%c0_33, %c0_34, %c145] : memref<2x3x512xf32, #tpu.memory_space<vmem>>, vector<2x1x256xf32>
    %62 = vector.shape_cast %61 : vector<2x1x256xf32> to vector<2x256xf32>
    %cst_35 = arith.constant 0.000000e+00 : f32
    %63 = vector.shape_cast %24 : vector<1x256xi1> to vector<1x256xi1>
    %64 = vector.broadcast %63 : vector<1x256xi1> to vector<2x256xi1>
    %65 = vector.broadcast %cst_35 : f32 to vector<2x256xf32>
    %66 = arith.select %64, %62, %65 : vector<2x256xi1>, vector<2x256xf32>
    %c0_36 = arith.constant 0 : index
    %67 = memref.load %arg1[%c0_36] : memref<81xf32, #tpu.memory_space<smem>>
    %68 = vector.broadcast %67 : f32 to vector<2x256xf32>
    %69 = arith.mulf %30, %68 : vector<2x256xf32>
    %c1 = arith.constant 1 : index
    %70 = memref.load %arg1[%c1] : memref<81xf32, #tpu.memory_space<smem>>
    %71 = vector.broadcast %70 : f32 to vector<2x256xf32>
    %72 = arith.mulf %32, %71 : vector<2x256xf32>
    %c2 = arith.constant 2 : index
    %73 = memref.load %arg1[%c2] : memref<81xf32, #tpu.memory_space<smem>>
    %74 = vector.broadcast %73 : f32 to vector<2x256xf32>
    %75 = arith.mulf %38, %74 : vector<2x256xf32>
    %c3 = arith.constant 3 : index
    %76 = memref.load %arg1[%c3] : memref<81xf32, #tpu.memory_space<smem>>
    %77 = vector.broadcast %76 : f32 to vector<2x256xf32>
    %78 = arith.mulf %44, %77 : vector<2x256xf32>
    %c4 = arith.constant 4 : index
    %79 = memref.load %arg1[%c4] : memref<81xf32, #tpu.memory_space<smem>>
    %80 = vector.broadcast %79 : f32 to vector<2x256xf32>
    %81 = arith.mulf %46, %80 : vector<2x256xf32>
    %c5 = arith.constant 5 : index
    %82 = memref.load %arg1[%c5] : memref<81xf32, #tpu.memory_space<smem>>
    %83 = vector.broadcast %82 : f32 to vector<2x256xf32>
    %84 = arith.mulf %52, %83 : vector<2x256xf32>
    %c6 = arith.constant 6 : index
    %85 = memref.load %arg1[%c6] : memref<81xf32, #tpu.memory_space<smem>>
    %86 = vector.broadcast %85 : f32 to vector<2x256xf32>
    %87 = arith.mulf %58, %86 : vector<2x256xf32>
    %c7 = arith.constant 7 : index
    %88 = memref.load %arg1[%c7] : memref<81xf32, #tpu.memory_space<smem>>
    %89 = vector.broadcast %88 : f32 to vector<2x256xf32>
    %90 = arith.mulf %60, %89 : vector<2x256xf32>
    %c8 = arith.constant 8 : index
    %91 = memref.load %arg1[%c8] : memref<81xf32, #tpu.memory_space<smem>>
    %92 = vector.broadcast %91 : f32 to vector<2x256xf32>
    %93 = arith.mulf %66, %92 : vector<2x256xf32>
    %94 = arith.addf %69, %72 : vector<2x256xf32>
    %95 = arith.addf %75, %78 : vector<2x256xf32>
    %96 = arith.addf %81, %84 : vector<2x256xf32>
    %97 = arith.addf %87, %90 : vector<2x256xf32>
    %98 = arith.addf %94, %95 : vector<2x256xf32>
    %99 = arith.addf %96, %97 : vector<2x256xf32>
    %100 = arith.addf %98, %99 : vector<2x256xf32>
    %101 = arith.addf %100, %93 : vector<2x256xf32>
    %102 = math.tanh %101 : vector<2x256xf32>
    %c0_37 = arith.constant 0 : index
    %c0_38 = arith.constant 0 : index
    %c0_39 = arith.constant 0 : index
    %103 = vector.load %arg3[%c0_37, %c0_38, %c0_39] : memref<2x9x256xf32, #tpu.memory_space<vmem>>, vector<2x1x256xf32>
    %104 = vector.shape_cast %103 : vector<2x1x256xf32> to vector<2x256xf32>
    %105 = vector.shape_cast %102 : vector<2x256xf32> to vector<2x1x256xf32>
    tpu.vector_store %arg3[%c0_37, %c0_38, %c0_39], %105 {strides = array<i32>} : memref<2x9x256xf32, #tpu.memory_space<vmem>>, vector<2x1x256xf32>,
    %c9 = arith.constant 9 : index
    %106 = memref.load %arg1[%c9] : memref<81xf32, #tpu.memory_space<smem>>
    %107 = vector.broadcast %106 : f32 to vector<2x256xf32>
    %108 = arith.mulf %30, %107 : vector<2x256xf32>
    %c10 = arith.constant 10 : index
    %109 = memref.load %arg1[%c10] : memref<81xf32, #tpu.memory_space<smem>>
    %110 = vector.broadcast %109 : f32 to vector<2x256xf32>
    %111 = arith.mulf %32, %110 : vector<2x256xf32>
    %c11 = arith.constant 11 : index
    %112 = memref.load %arg1[%c11] : memref<81xf32, #tpu.memory_space<smem>>
    %113 = vector.broadcast %112 : f32 to vector<2x256xf32>
    %114 = arith.mulf %38, %113 : vector<2x256xf32>
    %c12 = arith.constant 12 : index
    %115 = memref.load %arg1[%c12] : memref<81xf32, #tpu.memory_space<smem>>
    %116 = vector.broadcast %115 : f32 to vector<2x256xf32>
    %117 = arith.mulf %44, %116 : vector<2x256xf32>
    %c13 = arith.constant 13 : index
    %118 = memref.load %arg1[%c13] : memref<81xf32, #tpu.memory_space<smem>>
    %119 = vector.broadcast %118 : f32 to vector<2x256xf32>
    %120 = arith.mulf %46, %119 : vector<2x256xf32>
    %c14 = arith.constant 14 : index
    %121 = memref.load %arg1[%c14] : memref<81xf32, #tpu.memory_space<smem>>
    %122 = vector.broadcast %121 : f32 to vector<2x256xf32>
    %123 = arith.mulf %52, %122 : vector<2x256xf32>
    %c15 = arith.constant 15 : index
    %124 = memref.load %arg1[%c15] : memref<81xf32, #tpu.memory_space<smem>>
    %125 = vector.broadcast %124 : f32 to vector<2x256xf32>
    %126 = arith.mulf %58, %125 : vector<2x256xf32>
    %c16 = arith.constant 16 : index
    %127 = memref.load %arg1[%c16] : memref<81xf32, #tpu.memory_space<smem>>
    %128 = vector.broadcast %127 : f32 to vector<2x256xf32>
    %129 = arith.mulf %60, %128 : vector<2x256xf32>
    %c17 = arith.constant 17 : index
    %130 = memref.load %arg1[%c17] : memref<81xf32, #tpu.memory_space<smem>>
    %131 = vector.broadcast %130 : f32 to vector<2x256xf32>
    %132 = arith.mulf %66, %131 : vector<2x256xf32>
    %133 = arith.addf %108, %111 : vector<2x256xf32>
    %134 = arith.addf %114, %117 : vector<2x256xf32>
    %135 = arith.addf %120, %123 : vector<2x256xf32>
    %136 = arith.addf %126, %129 : vector<2x256xf32>
    %137 = arith.addf %133, %134 : vector<2x256xf32>
    %138 = arith.addf %135, %136 : vector<2x256xf32>
    %139 = arith.addf %137, %138 : vector<2x256xf32>
    %140 = arith.addf %139, %132 : vector<2x256xf32>
    %141 = math.tanh %140 : vector<2x256xf32>
    %c0_40 = arith.constant 0 : index
    %c1_41 = arith.constant 1 : index
    %c0_42 = arith.constant 0 : index
    %142 = vector.load %arg3[%c0_40, %c1_41, %c0_42] : memref<2x9x256xf32, #tpu.memory_space<vmem>>, vector<2x1x256xf32>
    %143 = vector.shape_cast %142 : vector<2x1x256xf32> to vector<2x256xf32>
    %144 = vector.shape_cast %141 : vector<2x256xf32> to vector<2x1x256xf32>
    tpu.vector_store %arg3[%c0_40, %c1_41, %c0_42], %144 {strides = array<i32>} : memref<2x9x256xf32, #tpu.memory_space<vmem>>, vector<2x1x256xf32>,
    %c18 = arith.constant 18 : index
    %145 = memref.load %arg1[%c18] : memref<81xf32, #tpu.memory_space<smem>>
    %146 = vector.broadcast %145 : f32 to vector<2x256xf32>
    %147 = arith.mulf %30, %146 : vector<2x256xf32>
    %c19 = arith.constant 19 : index
    %148 = memref.load %arg1[%c19] : memref<81xf32, #tpu.memory_space<smem>>
    %149 = vector.broadcast %148 : f32 to vector<2x256xf32>
    %150 = arith.mulf %32, %149 : vector<2x256xf32>
    %c20 = arith.constant 20 : index
    %151 = memref.load %arg1[%c20] : memref<81xf32, #tpu.memory_space<smem>>
    %152 = vector.broadcast %151 : f32 to vector<2x256xf32>
    %153 = arith.mulf %38, %152 : vector<2x256xf32>
    %c21 = arith.constant 21 : index
    %154 = memref.load %arg1[%c21] : memref<81xf32, #tpu.memory_space<smem>>
    %155 = vector.broadcast %154 : f32 to vector<2x256xf32>
    %156 = arith.mulf %44, %155 : vector<2x256xf32>
    %c22 = arith.constant 22 : index
    %157 = memref.load %arg1[%c22] : memref<81xf32, #tpu.memory_space<smem>>
    %158 = vector.broadcast %157 : f32 to vector<2x256xf32>
    %159 = arith.mulf %46, %158 : vector<2x256xf32>
    %c23 = arith.constant 23 : index
    %160 = memref.load %arg1[%c23] : memref<81xf32, #tpu.memory_space<smem>>
    %161 = vector.broadcast %160 : f32 to vector<2x256xf32>
    %162 = arith.mulf %52, %161 : vector<2x256xf32>
    %c24 = arith.constant 24 : index
    %163 = memref.load %arg1[%c24] : memref<81xf32, #tpu.memory_space<smem>>
    %164 = vector.broadcast %163 : f32 to vector<2x256xf32>
    %165 = arith.mulf %58, %164 : vector<2x256xf32>
    %c25 = arith.constant 25 : index
    %166 = memref.load %arg1[%c25] : memref<81xf32, #tpu.memory_space<smem>>
    %167 = vector.broadcast %166 : f32 to vector<2x256xf32>
    %168 = arith.mulf %60, %167 : vector<2x256xf32>
    %c26 = arith.constant 26 : index
    %169 = memref.load %arg1[%c26] : memref<81xf32, #tpu.memory_space<smem>>
    %170 = vector.broadcast %169 : f32 to vector<2x256xf32>
    %171 = arith.mulf %66, %170 : vector<2x256xf32>
    %172 = arith.addf %147, %150 : vector<2x256xf32>
    %173 = arith.addf %153, %156 : vector<2x256xf32>
    %174 = arith.addf %159, %162 : vector<2x256xf32>
    %175 = arith.addf %165, %168 : vector<2x256xf32>
    %176 = arith.addf %172, %173 : vector<2x256xf32>
    %177 = arith.addf %174, %175 : vector<2x256xf32>
    %178 = arith.addf %176, %177 : vector<2x256xf32>
    %179 = arith.addf %178, %171 : vector<2x256xf32>
    %180 = math.tanh %179 : vector<2x256xf32>
    %c0_43 = arith.constant 0 : index
    %c2_44 = arith.constant 2 : index
    %c0_45 = arith.constant 0 : index
    %181 = vector.load %arg3[%c0_43, %c2_44, %c0_45] : memref<2x9x256xf32, #tpu.memory_space<vmem>>, vector<2x1x256xf32>
    %182 = vector.shape_cast %181 : vector<2x1x256xf32> to vector<2x256xf32>
    %183 = vector.shape_cast %180 : vector<2x256xf32> to vector<2x1x256xf32>
    tpu.vector_store %arg3[%c0_43, %c2_44, %c0_45], %183 {strides = array<i32>} : memref<2x9x256xf32, #tpu.memory_space<vmem>>, vector<2x1x256xf32>,
    %c0_46 = arith.constant 0 : index
    %c1_47 = arith.constant 1 : index
    %c111_48 = arith.constant 111 : index
    %184 = vector.load %arg4[%c0_46, %c1_47, %c111_48] : memref<2x3x512xf32, #tpu.memory_space<vmem>>, vector<2x1x256xf32>
    %185 = vector.shape_cast %184 : vector<2x1x256xf32> to vector<2x256xf32>
    %cst_49 = arith.constant 0.000000e+00 : f32
    %186 = vector.shape_cast %22 : vector<1x256xi1> to vector<1x256xi1>
    %187 = vector.broadcast %186 : vector<1x256xi1> to vector<2x256xi1>
    %188 = vector.broadcast %cst_49 : f32 to vector<2x256xf32>
    %189 = arith.select %187, %185, %188 : vector<2x256xi1>, vector<2x256xf32>
    %c0_50 = arith.constant 0 : index
    %c1_51 = arith.constant 1 : index
    %c112_52 = arith.constant 112 : index
    %190 = vector.load %arg4[%c0_50, %c1_51, %c112_52] : memref<2x3x512xf32, #tpu.memory_space<vmem>>, vector<2x1x256xf32>
    %191 = vector.shape_cast %190 : vector<2x1x256xf32> to vector<2x256xf32>
    %c0_53 = arith.constant 0 : index
    %c1_54 = arith.constant 1 : index
    %c113_55 = arith.constant 113 : index
    %192 = vector.load %arg4[%c0_53, %c1_54, %c113_55] : memref<2x3x512xf32, #tpu.memory_space<vmem>>, vector<2x1x256xf32>
    %193 = vector.shape_cast %192 : vector<2x1x256xf32> to vector<2x256xf32>
    %cst_56 = arith.constant 0.000000e+00 : f32
    %194 = vector.shape_cast %24 : vector<1x256xi1> to vector<1x256xi1>
    %195 = vector.broadcast %194 : vector<1x256xi1> to vector<2x256xi1>
    %196 = vector.broadcast %cst_56 : f32 to vector<2x256xf32>
    %197 = arith.select %195, %193, %196 : vector<2x256xi1>, vector<2x256xf32>
    %c0_57 = arith.constant 0 : index
    %c1_58 = arith.constant 1 : index
    %c127_59 = arith.constant 127 : index
    %198 = vector.load %arg4[%c0_57, %c1_58, %c127_59] : memref<2x3x512xf32, #tpu.memory_space<vmem>>, vector<2x1x256xf32>
    %199 = vector.shape_cast %198 : vector<2x1x256xf32> to vector<2x256xf32>
    %cst_60 = arith.constant 0.000000e+00 : f32
    %200 = vector.shape_cast %22 : vector<1x256xi1> to vector<1x256xi1>
    %201 = vector.broadcast %200 : vector<1x256xi1> to vector<2x256xi1>
    %202 = vector.broadcast %cst_60 : f32 to vector<2x256xf32>
    %203 = arith.select %201, %199, %202 : vector<2x256xi1>, vector<2x256xf32>
    %c0_61 = arith.constant 0 : index
    %c1_62 = arith.constant 1 : index
    %c128_63 = arith.constant 128 : index
    %204 = vector.load %arg4[%c0_61, %c1_62, %c128_63] : memref<2x3x512xf32, #tpu.memory_space<vmem>>, vector<2x1x256xf32>
    %205 = vector.shape_cast %204 : vector<2x1x256xf32> to vector<2x256xf32>
    %c0_64 = arith.constant 0 : index
    %c1_65 = arith.constant 1 : index
    %c129_66 = arith.constant 129 : index
    %206 = vector.load %arg4[%c0_64, %c1_65, %c129_66] : memref<2x3x512xf32, #tpu.memory_space<vmem>>, vector<2x1x256xf32>
    %207 = vector.shape_cast %206 : vector<2x1x256xf32> to vector<2x256xf32>
    %cst_67 = arith.constant 0.000000e+00 : f32
    %208 = vector.shape_cast %24 : vector<1x256xi1> to vector<1x256xi1>
    %209 = vector.broadcast %208 : vector<1x256xi1> to vector<2x256xi1>
    %210 = vector.broadcast %cst_67 : f32 to vector<2x256xf32>
    %211 = arith.select %209, %207, %210 : vector<2x256xi1>, vector<2x256xf32>
    %c0_68 = arith.constant 0 : index
    %c1_69 = arith.constant 1 : index
    %c143_70 = arith.constant 143 : index
    %212 = vector.load %arg4[%c0_68, %c1_69, %c143_70] : memref<2x3x512xf32, #tpu.memory_space<vmem>>, vector<2x1x256xf32>
    %213 = vector.shape_cast %212 : vector<2x1x256xf32> to vector<2x256xf32>
    %cst_71 = arith.constant 0.000000e+00 : f32
    %214 = vector.shape_cast %22 : vector<1x256xi1> to vector<1x256xi1>
    %215 = vector.broadcast %214 : vector<1x256xi1> to vector<2x256xi1>
    %216 = vector.broadcast %cst_71 : f32 to vector<2x256xf32>
    %217 = arith.select %215, %213, %216 : vector<2x256xi1>, vector<2x256xf32>
    %c0_72 = arith.constant 0 : index
    %c1_73 = arith.constant 1 : index
    %c144_74 = arith.constant 144 : index
    %218 = vector.load %arg4[%c0_72, %c1_73, %c144_74] : memref<2x3x512xf32, #tpu.memory_space<vmem>>, vector<2x1x256xf32>
    %219 = vector.shape_cast %218 : vector<2x1x256xf32> to vector<2x256xf32>
    %c0_75 = arith.constant 0 : index
    %c1_76 = arith.constant 1 : index
    %c145_77 = arith.constant 145 : index
    %220 = vector.load %arg4[%c0_75, %c1_76, %c145_77] : memref<2x3x512xf32, #tpu.memory_space<vmem>>, vector<2x1x256xf32>
    %221 = vector.shape_cast %220 : vector<2x1x256xf32> to vector<2x256xf32>
    %cst_78 = arith.constant 0.000000e+00 : f32
    %222 = vector.shape_cast %24 : vector<1x256xi1> to vector<1x256xi1>
    %223 = vector.broadcast %222 : vector<1x256xi1> to vector<2x256xi1>
    %224 = vector.broadcast %cst_78 : f32 to vector<2x256xf32>
    %225 = arith.select %223, %221, %224 : vector<2x256xi1>, vector<2x256xf32>
    %c27 = arith.constant 27 : index
    %226 = memref.load %arg1[%c27] : memref<81xf32, #tpu.memory_space<smem>>
    %227 = vector.broadcast %226 : f32 to vector<2x256xf32>
    %228 = arith.mulf %189, %227 : vector<2x256xf32>
    %c28 = arith.constant 28 : index
    %229 = memref.load %arg1[%c28] : memref<81xf32, #tpu.memory_space<smem>>
    %230 = vector.broadcast %229 : f32 to vector<2x256xf32>
    %231 = arith.mulf %191, %230 : vector<2x256xf32>
    %c29 = arith.constant 29 : index
    %232 = memref.load %arg1[%c29] : memref<81xf32, #tpu.memory_space<smem>>
    %233 = vector.broadcast %232 : f32 to vector<2x256xf32>
    %234 = arith.mulf %197, %233 : vector<2x256xf32>
    %c30 = arith.constant 30 : index
    %235 = memref.load %arg1[%c30] : memref<81xf32, #tpu.memory_space<smem>>
    %236 = vector.broadcast %235 : f32 to vector<2x256xf32>
    %237 = arith.mulf %203, %236 : vector<2x256xf32>
    %c31 = arith.constant 31 : index
    %238 = memref.load %arg1[%c31] : memref<81xf32, #tpu.memory_space<smem>>
    %239 = vector.broadcast %238 : f32 to vector<2x256xf32>
    %240 = arith.mulf %205, %239 : vector<2x256xf32>
    %c32 = arith.constant 32 : index
    %241 = memref.load %arg1[%c32] : memref<81xf32, #tpu.memory_space<smem>>
    %242 = vector.broadcast %241 : f32 to vector<2x256xf32>
    %243 = arith.mulf %211, %242 : vector<2x256xf32>
    %c33 = arith.constant 33 : index
    %244 = memref.load %arg1[%c33] : memref<81xf32, #tpu.memory_space<smem>>
    %245 = vector.broadcast %244 : f32 to vector<2x256xf32>
    %246 = arith.mulf %217, %245 : vector<2x256xf32>
    %c34 = arith.constant 34 : index
    %247 = memref.load %arg1[%c34] : memref<81xf32, #tpu.memory_space<smem>>
    %248 = vector.broadcast %247 : f32 to vector<2x256xf32>
    %249 = arith.mulf %219, %248 : vector<2x256xf32>
    %c35 = arith.constant 35 : index
    %250 = memref.load %arg1[%c35] : memref<81xf32, #tpu.memory_space<smem>>
    %251 = vector.broadcast %250 : f32 to vector<2x256xf32>
    %252 = arith.mulf %225, %251 : vector<2x256xf32>
    %253 = arith.addf %228, %231 : vector<2x256xf32>
    %254 = arith.addf %234, %237 : vector<2x256xf32>
    %255 = arith.addf %240, %243 : vector<2x256xf32>
    %256 = arith.addf %246, %249 : vector<2x256xf32>
    %257 = arith.addf %253, %254 : vector<2x256xf32>
    %258 = arith.addf %255, %256 : vector<2x256xf32>
    %259 = arith.addf %257, %258 : vector<2x256xf32>
    %260 = arith.addf %259, %252 : vector<2x256xf32>
    %261 = math.tanh %260 : vector<2x256xf32>
    %c0_79 = arith.constant 0 : index
    %c3_80 = arith.constant 3 : index
    %c0_81 = arith.constant 0 : index
    %262 = vector.load %arg3[%c0_79, %c3_80, %c0_81] : memref<2x9x256xf32, #tpu.memory_space<vmem>>, vector<2x1x256xf32>
    %263 = vector.shape_cast %262 : vector<2x1x256xf32> to vector<2x256xf32>
    %264 = vector.shape_cast %261 : vector<2x256xf32> to vector<2x1x256xf32>
    tpu.vector_store %arg3[%c0_79, %c3_80, %c0_81], %264 {strides = array<i32>} : memref<2x9x256xf32, #tpu.memory_space<vmem>>, vector<2x1x256xf32>,
    %c36 = arith.constant 36 : index
    %265 = memref.load %arg1[%c36] : memref<81xf32, #tpu.memory_space<smem>>
    %266 = vector.broadcast %265 : f32 to vector<2x256xf32>
    %267 = arith.mulf %189, %266 : vector<2x256xf32>
    %c37 = arith.constant 37 : index
    %268 = memref.load %arg1[%c37] : memref<81xf32, #tpu.memory_space<smem>>
    %269 = vector.broadcast %268 : f32 to vector<2x256xf32>
    %270 = arith.mulf %191, %269 : vector<2x256xf32>
    %c38 = arith.constant 38 : index
    %271 = memref.load %arg1[%c38] : memref<81xf32, #tpu.memory_space<smem>>
    %272 = vector.broadcast %271 : f32 to vector<2x256xf32>
    %273 = arith.mulf %197, %272 : vector<2x256xf32>
    %c39 = arith.constant 39 : index
    %274 = memref.load %arg1[%c39] : memref<81xf32, #tpu.memory_space<smem>>
    %275 = vector.broadcast %274 : f32 to vector<2x256xf32>
    %276 = arith.mulf %203, %275 : vector<2x256xf32>
    %c40 = arith.constant 40 : index
    %277 = memref.load %arg1[%c40] : memref<81xf32, #tpu.memory_space<smem>>
    %278 = vector.broadcast %277 : f32 to vector<2x256xf32>
    %279 = arith.mulf %205, %278 : vector<2x256xf32>
    %c41 = arith.constant 41 : index
    %280 = memref.load %arg1[%c41] : memref<81xf32, #tpu.memory_space<smem>>
    %281 = vector.broadcast %280 : f32 to vector<2x256xf32>
    %282 = arith.mulf %211, %281 : vector<2x256xf32>
    %c42 = arith.constant 42 : index
    %283 = memref.load %arg1[%c42] : memref<81xf32, #tpu.memory_space<smem>>
    %284 = vector.broadcast %283 : f32 to vector<2x256xf32>
    %285 = arith.mulf %217, %284 : vector<2x256xf32>
    %c43 = arith.constant 43 : index
    %286 = memref.load %arg1[%c43] : memref<81xf32, #tpu.memory_space<smem>>
    %287 = vector.broadcast %286 : f32 to vector<2x256xf32>
    %288 = arith.mulf %219, %287 : vector<2x256xf32>
    %c44 = arith.constant 44 : index
    %289 = memref.load %arg1[%c44] : memref<81xf32, #tpu.memory_space<smem>>
    %290 = vector.broadcast %289 : f32 to vector<2x256xf32>
    %291 = arith.mulf %225, %290 : vector<2x256xf32>
    %292 = arith.addf %267, %270 : vector<2x256xf32>
    %293 = arith.addf %273, %276 : vector<2x256xf32>
    %294 = arith.addf %279, %282 : vector<2x256xf32>
    %295 = arith.addf %285, %288 : vector<2x256xf32>
    %296 = arith.addf %292, %293 : vector<2x256xf32>
    %297 = arith.addf %294, %295 : vector<2x256xf32>
    %298 = arith.addf %296, %297 : vector<2x256xf32>
    %299 = arith.addf %298, %291 : vector<2x256xf32>
    %300 = math.tanh %299 : vector<2x256xf32>
    %c0_82 = arith.constant 0 : index
    %c4_83 = arith.constant 4 : index
    %c0_84 = arith.constant 0 : index
    %301 = vector.load %arg3[%c0_82, %c4_83, %c0_84] : memref<2x9x256xf32, #tpu.memory_space<vmem>>, vector<2x1x256xf32>
    %302 = vector.shape_cast %301 : vector<2x1x256xf32> to vector<2x256xf32>
    %303 = vector.shape_cast %300 : vector<2x256xf32> to vector<2x1x256xf32>
    tpu.vector_store %arg3[%c0_82, %c4_83, %c0_84], %303 {strides = array<i32>} : memref<2x9x256xf32, #tpu.memory_space<vmem>>, vector<2x1x256xf32>,
    %c45 = arith.constant 45 : index
    %304 = memref.load %arg1[%c45] : memref<81xf32, #tpu.memory_space<smem>>
    %305 = vector.broadcast %304 : f32 to vector<2x256xf32>
    %306 = arith.mulf %189, %305 : vector<2x256xf32>
    %c46 = arith.constant 46 : index
    %307 = memref.load %arg1[%c46] : memref<81xf32, #tpu.memory_space<smem>>
    %308 = vector.broadcast %307 : f32 to vector<2x256xf32>
    %309 = arith.mulf %191, %308 : vector<2x256xf32>
    %c47 = arith.constant 47 : index
    %310 = memref.load %arg1[%c47] : memref<81xf32, #tpu.memory_space<smem>>
    %311 = vector.broadcast %310 : f32 to vector<2x256xf32>
    %312 = arith.mulf %197, %311 : vector<2x256xf32>
    %c48 = arith.constant 48 : index
    %313 = memref.load %arg1[%c48] : memref<81xf32, #tpu.memory_space<smem>>
    %314 = vector.broadcast %313 : f32 to vector<2x256xf32>
    %315 = arith.mulf %203, %314 : vector<2x256xf32>
    %c49 = arith.constant 49 : index
    %316 = memref.load %arg1[%c49] : memref<81xf32, #tpu.memory_space<smem>>
    %317 = vector.broadcast %316 : f32 to vector<2x256xf32>
    %318 = arith.mulf %205, %317 : vector<2x256xf32>
    %c50 = arith.constant 50 : index
    %319 = memref.load %arg1[%c50] : memref<81xf32, #tpu.memory_space<smem>>
    %320 = vector.broadcast %319 : f32 to vector<2x256xf32>
    %321 = arith.mulf %211, %320 : vector<2x256xf32>
    %c51 = arith.constant 51 : index
    %322 = memref.load %arg1[%c51] : memref<81xf32, #tpu.memory_space<smem>>
    %323 = vector.broadcast %322 : f32 to vector<2x256xf32>
    %324 = arith.mulf %217, %323 : vector<2x256xf32>
    %c52 = arith.constant 52 : index
    %325 = memref.load %arg1[%c52] : memref<81xf32, #tpu.memory_space<smem>>
    %326 = vector.broadcast %325 : f32 to vector<2x256xf32>
    %327 = arith.mulf %219, %326 : vector<2x256xf32>
    %c53 = arith.constant 53 : index
    %328 = memref.load %arg1[%c53] : memref<81xf32, #tpu.memory_space<smem>>
    %329 = vector.broadcast %328 : f32 to vector<2x256xf32>
    %330 = arith.mulf %225, %329 : vector<2x256xf32>
    %331 = arith.addf %306, %309 : vector<2x256xf32>
    %332 = arith.addf %312, %315 : vector<2x256xf32>
    %333 = arith.addf %318, %321 : vector<2x256xf32>
    %334 = arith.addf %324, %327 : vector<2x256xf32>
    %335 = arith.addf %331, %332 : vector<2x256xf32>
    %336 = arith.addf %333, %334 : vector<2x256xf32>
    %337 = arith.addf %335, %336 : vector<2x256xf32>
    %338 = arith.addf %337, %330 : vector<2x256xf32>
    %339 = math.tanh %338 : vector<2x256xf32>
    %c0_85 = arith.constant 0 : index
    %c5_86 = arith.constant 5 : index
    %c0_87 = arith.constant 0 : index
    %340 = vector.load %arg3[%c0_85, %c5_86, %c0_87] : memref<2x9x256xf32, #tpu.memory_space<vmem>>, vector<2x1x256xf32>
    %341 = vector.shape_cast %340 : vector<2x1x256xf32> to vector<2x256xf32>
    %342 = vector.shape_cast %339 : vector<2x256xf32> to vector<2x1x256xf32>
    tpu.vector_store %arg3[%c0_85, %c5_86, %c0_87], %342 {strides = array<i32>} : memref<2x9x256xf32, #tpu.memory_space<vmem>>, vector<2x1x256xf32>,
    %c0_88 = arith.constant 0 : index
    %c2_89 = arith.constant 2 : index
    %c111_90 = arith.constant 111 : index
    %343 = vector.load %arg4[%c0_88, %c2_89, %c111_90] : memref<2x3x512xf32, #tpu.memory_space<vmem>>, vector<2x1x256xf32>
    %344 = vector.shape_cast %343 : vector<2x1x256xf32> to vector<2x256xf32>
    %cst_91 = arith.constant 0.000000e+00 : f32
    %345 = vector.shape_cast %22 : vector<1x256xi1> to vector<1x256xi1>
    %346 = vector.broadcast %345 : vector<1x256xi1> to vector<2x256xi1>
    %347 = vector.broadcast %cst_91 : f32 to vector<2x256xf32>
    %348 = arith.select %346, %344, %347 : vector<2x256xi1>, vector<2x256xf32>
    %c0_92 = arith.constant 0 : index
    %c2_93 = arith.constant 2 : index
    %c112_94 = arith.constant 112 : index
    %349 = vector.load %arg4[%c0_92, %c2_93, %c112_94] : memref<2x3x512xf32, #tpu.memory_space<vmem>>, vector<2x1x256xf32>
    %350 = vector.shape_cast %349 : vector<2x1x256xf32> to vector<2x256xf32>
    %c0_95 = arith.constant 0 : index
    %c2_96 = arith.constant 2 : index
    %c113_97 = arith.constant 113 : index
    %351 = vector.load %arg4[%c0_95, %c2_96, %c113_97] : memref<2x3x512xf32, #tpu.memory_space<vmem>>, vector<2x1x256xf32>
    %352 = vector.shape_cast %351 : vector<2x1x256xf32> to vector<2x256xf32>
    %cst_98 = arith.constant 0.000000e+00 : f32
    %353 = vector.shape_cast %24 : vector<1x256xi1> to vector<1x256xi1>
    %354 = vector.broadcast %353 : vector<1x256xi1> to vector<2x256xi1>
    %355 = vector.broadcast %cst_98 : f32 to vector<2x256xf32>
    %356 = arith.select %354, %352, %355 : vector<2x256xi1>, vector<2x256xf32>
    %c0_99 = arith.constant 0 : index
    %c2_100 = arith.constant 2 : index
    %c127_101 = arith.constant 127 : index
    %357 = vector.load %arg4[%c0_99, %c2_100, %c127_101] : memref<2x3x512xf32, #tpu.memory_space<vmem>>, vector<2x1x256xf32>
    %358 = vector.shape_cast %357 : vector<2x1x256xf32> to vector<2x256xf32>
    %cst_102 = arith.constant 0.000000e+00 : f32
    %359 = vector.shape_cast %22 : vector<1x256xi1> to vector<1x256xi1>
    %360 = vector.broadcast %359 : vector<1x256xi1> to vector<2x256xi1>
    %361 = vector.broadcast %cst_102 : f32 to vector<2x256xf32>
    %362 = arith.select %360, %358, %361 : vector<2x256xi1>, vector<2x256xf32>
    %c0_103 = arith.constant 0 : index
    %c2_104 = arith.constant 2 : index
    %c128_105 = arith.constant 128 : index
    %363 = vector.load %arg4[%c0_103, %c2_104, %c128_105] : memref<2x3x512xf32, #tpu.memory_space<vmem>>, vector<2x1x256xf32>
    %364 = vector.shape_cast %363 : vector<2x1x256xf32> to vector<2x256xf32>
    %c0_106 = arith.constant 0 : index
    %c2_107 = arith.constant 2 : index
    %c129_108 = arith.constant 129 : index
    %365 = vector.load %arg4[%c0_106, %c2_107, %c129_108] : memref<2x3x512xf32, #tpu.memory_space<vmem>>, vector<2x1x256xf32>
    %366 = vector.shape_cast %365 : vector<2x1x256xf32> to vector<2x256xf32>
    %cst_109 = arith.constant 0.000000e+00 : f32
    %367 = vector.shape_cast %24 : vector<1x256xi1> to vector<1x256xi1>
    %368 = vector.broadcast %367 : vector<1x256xi1> to vector<2x256xi1>
    %369 = vector.broadcast %cst_109 : f32 to vector<2x256xf32>
    %370 = arith.select %368, %366, %369 : vector<2x256xi1>, vector<2x256xf32>
    %c0_110 = arith.constant 0 : index
    %c2_111 = arith.constant 2 : index
    %c143_112 = arith.constant 143 : index
    %371 = vector.load %arg4[%c0_110, %c2_111, %c143_112] : memref<2x3x512xf32, #tpu.memory_space<vmem>>, vector<2x1x256xf32>
    %372 = vector.shape_cast %371 : vector<2x1x256xf32> to vector<2x256xf32>
    %cst_113 = arith.constant 0.000000e+00 : f32
    %373 = vector.shape_cast %22 : vector<1x256xi1> to vector<1x256xi1>
    %374 = vector.broadcast %373 : vector<1x256xi1> to vector<2x256xi1>
    %375 = vector.broadcast %cst_113 : f32 to vector<2x256xf32>
    %376 = arith.select %374, %372, %375 : vector<2x256xi1>, vector<2x256xf32>
    %c0_114 = arith.constant 0 : index
    %c2_115 = arith.constant 2 : index
    %c144_116 = arith.constant 144 : index
    %377 = vector.load %arg4[%c0_114, %c2_115, %c144_116] : memref<2x3x512xf32, #tpu.memory_space<vmem>>, vector<2x1x256xf32>
    %378 = vector.shape_cast %377 : vector<2x1x256xf32> to vector<2x256xf32>
    %c0_117 = arith.constant 0 : index
    %c2_118 = arith.constant 2 : index
    %c145_119 = arith.constant 145 : index
    %379 = vector.load %arg4[%c0_117, %c2_118, %c145_119] : memref<2x3x512xf32, #tpu.memory_space<vmem>>, vector<2x1x256xf32>
    %380 = vector.shape_cast %379 : vector<2x1x256xf32> to vector<2x256xf32>
    %cst_120 = arith.constant 0.000000e+00 : f32
    %381 = vector.shape_cast %24 : vector<1x256xi1> to vector<1x256xi1>
    %382 = vector.broadcast %381 : vector<1x256xi1> to vector<2x256xi1>
    %383 = vector.broadcast %cst_120 : f32 to vector<2x256xf32>
    %384 = arith.select %382, %380, %383 : vector<2x256xi1>, vector<2x256xf32>
    %c54 = arith.constant 54 : index
    %385 = memref.load %arg1[%c54] : memref<81xf32, #tpu.memory_space<smem>>
    %386 = vector.broadcast %385 : f32 to vector<2x256xf32>
    %387 = arith.mulf %348, %386 : vector<2x256xf32>
    %c55 = arith.constant 55 : index
    %388 = memref.load %arg1[%c55] : memref<81xf32, #tpu.memory_space<smem>>
    %389 = vector.broadcast %388 : f32 to vector<2x256xf32>
    %390 = arith.mulf %350, %389 : vector<2x256xf32>
    %c56 = arith.constant 56 : index
    %391 = memref.load %arg1[%c56] : memref<81xf32, #tpu.memory_space<smem>>
    %392 = vector.broadcast %391 : f32 to vector<2x256xf32>
    %393 = arith.mulf %356, %392 : vector<2x256xf32>
    %c57 = arith.constant 57 : index
    %394 = memref.load %arg1[%c57] : memref<81xf32, #tpu.memory_space<smem>>
    %395 = vector.broadcast %394 : f32 to vector<2x256xf32>
    %396 = arith.mulf %362, %395 : vector<2x256xf32>
    %c58 = arith.constant 58 : index
    %397 = memref.load %arg1[%c58] : memref<81xf32, #tpu.memory_space<smem>>
    %398 = vector.broadcast %397 : f32 to vector<2x256xf32>
    %399 = arith.mulf %364, %398 : vector<2x256xf32>
    %c59 = arith.constant 59 : index
    %400 = memref.load %arg1[%c59] : memref<81xf32, #tpu.memory_space<smem>>
    %401 = vector.broadcast %400 : f32 to vector<2x256xf32>
    %402 = arith.mulf %370, %401 : vector<2x256xf32>
    %c60 = arith.constant 60 : index
    %403 = memref.load %arg1[%c60] : memref<81xf32, #tpu.memory_space<smem>>
    %404 = vector.broadcast %403 : f32 to vector<2x256xf32>
    %405 = arith.mulf %376, %404 : vector<2x256xf32>
    %c61 = arith.constant 61 : index
    %406 = memref.load %arg1[%c61] : memref<81xf32, #tpu.memory_space<smem>>
    %407 = vector.broadcast %406 : f32 to vector<2x256xf32>
    %408 = arith.mulf %378, %407 : vector<2x256xf32>
    %c62 = arith.constant 62 : index
    %409 = memref.load %arg1[%c62] : memref<81xf32, #tpu.memory_space<smem>>
    %410 = vector.broadcast %409 : f32 to vector<2x256xf32>
    %411 = arith.mulf %384, %410 : vector<2x256xf32>
    %412 = arith.addf %387, %390 : vector<2x256xf32>
    %413 = arith.addf %393, %396 : vector<2x256xf32>
    %414 = arith.addf %399, %402 : vector<2x256xf32>
    %415 = arith.addf %405, %408 : vector<2x256xf32>
    %416 = arith.addf %412, %413 : vector<2x256xf32>
    %417 = arith.addf %414, %415 : vector<2x256xf32>
    %418 = arith.addf %416, %417 : vector<2x256xf32>
    %419 = arith.addf %418, %411 : vector<2x256xf32>
    %420 = math.tanh %419 : vector<2x256xf32>
    %c0_121 = arith.constant 0 : index
    %c6_122 = arith.constant 6 : index
    %c0_123 = arith.constant 0 : index
    %421 = vector.load %arg3[%c0_121, %c6_122, %c0_123] : memref<2x9x256xf32, #tpu.memory_space<vmem>>, vector<2x1x256xf32>
    %422 = vector.shape_cast %421 : vector<2x1x256xf32> to vector<2x256xf32>
    %423 = vector.shape_cast %420 : vector<2x256xf32> to vector<2x1x256xf32>
    tpu.vector_store %arg3[%c0_121, %c6_122, %c0_123], %423 {strides = array<i32>} : memref<2x9x256xf32, #tpu.memory_space<vmem>>, vector<2x1x256xf32>,
    %c63 = arith.constant 63 : index
    %424 = memref.load %arg1[%c63] : memref<81xf32, #tpu.memory_space<smem>>
    %425 = vector.broadcast %424 : f32 to vector<2x256xf32>
    %426 = arith.mulf %348, %425 : vector<2x256xf32>
    %c64 = arith.constant 64 : index
    %427 = memref.load %arg1[%c64] : memref<81xf32, #tpu.memory_space<smem>>
    %428 = vector.broadcast %427 : f32 to vector<2x256xf32>
    %429 = arith.mulf %350, %428 : vector<2x256xf32>
    %c65 = arith.constant 65 : index
    %430 = memref.load %arg1[%c65] : memref<81xf32, #tpu.memory_space<smem>>
    %431 = vector.broadcast %430 : f32 to vector<2x256xf32>
    %432 = arith.mulf %356, %431 : vector<2x256xf32>
    %c66 = arith.constant 66 : index
    %433 = memref.load %arg1[%c66] : memref<81xf32, #tpu.memory_space<smem>>
    %434 = vector.broadcast %433 : f32 to vector<2x256xf32>
    %435 = arith.mulf %362, %434 : vector<2x256xf32>
    %c67 = arith.constant 67 : index
    %436 = memref.load %arg1[%c67] : memref<81xf32, #tpu.memory_space<smem>>
    %437 = vector.broadcast %436 : f32 to vector<2x256xf32>
    %438 = arith.mulf %364, %437 : vector<2x256xf32>
    %c68 = arith.constant 68 : index
    %439 = memref.load %arg1[%c68] : memref<81xf32, #tpu.memory_space<smem>>
    %440 = vector.broadcast %439 : f32 to vector<2x256xf32>
    %441 = arith.mulf %370, %440 : vector<2x256xf32>
    %c69 = arith.constant 69 : index
    %442 = memref.load %arg1[%c69] : memref<81xf32, #tpu.memory_space<smem>>
    %443 = vector.broadcast %442 : f32 to vector<2x256xf32>
    %444 = arith.mulf %376, %443 : vector<2x256xf32>
    %c70 = arith.constant 70 : index
    %445 = memref.load %arg1[%c70] : memref<81xf32, #tpu.memory_space<smem>>
    %446 = vector.broadcast %445 : f32 to vector<2x256xf32>
    %447 = arith.mulf %378, %446 : vector<2x256xf32>
    %c71 = arith.constant 71 : index
    %448 = memref.load %arg1[%c71] : memref<81xf32, #tpu.memory_space<smem>>
    %449 = vector.broadcast %448 : f32 to vector<2x256xf32>
    %450 = arith.mulf %384, %449 : vector<2x256xf32>
    %451 = arith.addf %426, %429 : vector<2x256xf32>
    %452 = arith.addf %432, %435 : vector<2x256xf32>
    %453 = arith.addf %438, %441 : vector<2x256xf32>
    %454 = arith.addf %444, %447 : vector<2x256xf32>
    %455 = arith.addf %451, %452 : vector<2x256xf32>
    %456 = arith.addf %453, %454 : vector<2x256xf32>
    %457 = arith.addf %455, %456 : vector<2x256xf32>
    %458 = arith.addf %457, %450 : vector<2x256xf32>
    %459 = math.tanh %458 : vector<2x256xf32>
    %c0_124 = arith.constant 0 : index
    %c7_125 = arith.constant 7 : index
    %c0_126 = arith.constant 0 : index
    %460 = vector.load %arg3[%c0_124, %c7_125, %c0_126] : memref<2x9x256xf32, #tpu.memory_space<vmem>>, vector<2x1x256xf32>
    %461 = vector.shape_cast %460 : vector<2x1x256xf32> to vector<2x256xf32>
    %462 = vector.shape_cast %459 : vector<2x256xf32> to vector<2x1x256xf32>
    tpu.vector_store %arg3[%c0_124, %c7_125, %c0_126], %462 {strides = array<i32>} : memref<2x9x256xf32, #tpu.memory_space<vmem>>, vector<2x1x256xf32>,
    %c72 = arith.constant 72 : index
    %463 = memref.load %arg1[%c72] : memref<81xf32, #tpu.memory_space<smem>>
    %464 = vector.broadcast %463 : f32 to vector<2x256xf32>
    %465 = arith.mulf %348, %464 : vector<2x256xf32>
    %c73 = arith.constant 73 : index
    %466 = memref.load %arg1[%c73] : memref<81xf32, #tpu.memory_space<smem>>
    %467 = vector.broadcast %466 : f32 to vector<2x256xf32>
    %468 = arith.mulf %350, %467 : vector<2x256xf32>
    %c74 = arith.constant 74 : index
    %469 = memref.load %arg1[%c74] : memref<81xf32, #tpu.memory_space<smem>>
    %470 = vector.broadcast %469 : f32 to vector<2x256xf32>
    %471 = arith.mulf %356, %470 : vector<2x256xf32>
    %c75 = arith.constant 75 : index
    %472 = memref.load %arg1[%c75] : memref<81xf32, #tpu.memory_space<smem>>
    %473 = vector.broadcast %472 : f32 to vector<2x256xf32>
    %474 = arith.mulf %362, %473 : vector<2x256xf32>
    %c76 = arith.constant 76 : index
    %475 = memref.load %arg1[%c76] : memref<81xf32, #tpu.memory_space<smem>>
    %476 = vector.broadcast %475 : f32 to vector<2x256xf32>
    %477 = arith.mulf %364, %476 : vector<2x256xf32>
    %c77 = arith.constant 77 : index
    %478 = memref.load %arg1[%c77] : memref<81xf32, #tpu.memory_space<smem>>
    %479 = vector.broadcast %478 : f32 to vector<2x256xf32>
    %480 = arith.mulf %370, %479 : vector<2x256xf32>
    %c78 = arith.constant 78 : index
    %481 = memref.load %arg1[%c78] : memref<81xf32, #tpu.memory_space<smem>>
    %482 = vector.broadcast %481 : f32 to vector<2x256xf32>
    %483 = arith.mulf %376, %482 : vector<2x256xf32>
    %c79 = arith.constant 79 : index
    %484 = memref.load %arg1[%c79] : memref<81xf32, #tpu.memory_space<smem>>
    %485 = vector.broadcast %484 : f32 to vector<2x256xf32>
    %486 = arith.mulf %378, %485 : vector<2x256xf32>
    %c80 = arith.constant 80 : index
    %487 = memref.load %arg1[%c80] : memref<81xf32, #tpu.memory_space<smem>>
    %488 = vector.broadcast %487 : f32 to vector<2x256xf32>
    %489 = arith.mulf %384, %488 : vector<2x256xf32>
    %490 = arith.addf %465, %468 : vector<2x256xf32>
    %491 = arith.addf %471, %474 : vector<2x256xf32>
    %492 = arith.addf %477, %480 : vector<2x256xf32>
    %493 = arith.addf %483, %486 : vector<2x256xf32>
    %494 = arith.addf %490, %491 : vector<2x256xf32>
    %495 = arith.addf %492, %493 : vector<2x256xf32>
    %496 = arith.addf %494, %495 : vector<2x256xf32>
    %497 = arith.addf %496, %489 : vector<2x256xf32>
    %498 = math.tanh %497 : vector<2x256xf32>
    %c0_127 = arith.constant 0 : index
    %c8_128 = arith.constant 8 : index
    %c0_129 = arith.constant 0 : index
    %499 = vector.load %arg3[%c0_127, %c8_128, %c0_129] : memref<2x9x256xf32, #tpu.memory_space<vmem>>, vector<2x1x256xf32>
    %500 = vector.shape_cast %499 : vector<2x1x256xf32> to vector<2x256xf32>
    %501 = vector.shape_cast %498 : vector<2x256xf32> to vector<2x1x256xf32>
    tpu.vector_store %arg3[%c0_127, %c8_128, %c0_129], %501 {strides = array<i32>} : memref<2x9x256xf32, #tpu.memory_space<vmem>>, vector<2x1x256xf32>,
    return
  }
  func.func @transform_0(%arg0: i32, %arg1: memref<81xf32, #tpu.memory_space<smem>>) -> (i32, i32, i32) {
    %c0_i32 = arith.constant 0 : i32
    %c0_i32_0 = arith.constant 0 : i32
    %c0_i32_1 = arith.constant 0 : i32
    return %arg0, %c0_i32, %c0_i32_0 : i32, i32, i32
  }
  func.func @transform_1(%arg0: i32, %arg1: memref<81xf32, #tpu.memory_space<smem>>) -> (i32, i32, i32) {
    %c0_i32 = arith.constant 0 : i32
    %c0_i32_0 = arith.constant 0 : i32
    %c0_i32_1 = arith.constant 0 : i32
    return %arg0, %c0_i32, %c0_i32_0 : i32, i32, i32
  }
}

</mosaic_0001>

<bundles_post_ra>
// kernel: tpu_custom_call.1
= control target key start
LH: loop header
LB: loop body
LE: loop exit
PB: predicated region body
PF: predicated region fallthrough
CT: control target
= control target key end

     0   :  { %s4612_s0 = inlined_call_operand.vmem [shape: f32[81], index: 0, kind: input, shape index: {}]   ;;  %s4613_s1 = inlined_call_operand.vmem [shape: f32[4,3,256], index: 1, kind: input, shape index: {}]   ;;  %s4614_s2 = inlined_call_operand.vmem [shape: f32[4,9,256], index: 2, kind: output, shape index: {}]  }
   0x1   :  { %s7_s11 = sshll.u32 %s4612_s0, 4  ;;  %s8_s11 = int_to_ptr.vmem [resolvable:$true] %s7_s11 }
   0x2   :  { %s2976_s12 = scalar_lea.vmem %s8_s11, 16  ;;  %p2981_p1 = scmp.lt.s32.totalorder %s8_s11, %s8_s11 }
   0x3   :  { %p2977_p0 = scmp.ne.s32.totalorder %s8_s11, %s2976_s12  ;;  %p2982_p2 = scmp.lt.s32.totalorder %s2976_s12, %s2976_s12 }
   0x5   :  { %p2983_p3 = por %p2982_p2, %p2981_p1 }
   0x7   :  { %p2984_p4 = pnand %p2983_p3, %p2977_p0 }
   0x9   :  { %2987 = shalt.err (!%p2984_p4)  }
   0xa   :  { %s2998_s13 = smov [#allocation4]  }
   0xb   :  { %10 = dma.vmem_to_smem %s8_s11, 16, %s2998_s13, [#allocation3] }
   0xc   :  { %2992 = dma.done.wait [#allocation3], 16 }
   0xd   :  { %2993 = vsyncadd [#allocation3], 4294967280 }
   0xe   :  { %12 = sfence }
   0xf   :  { %s3027_s14 = smov 0  }
  0x10 LB: > { %s2809_s0 = sadd.s32 4294967295, %s2996_s14   ;;  %p2813_p5 = scmp.ge.s32.totalorder %s2996_s14, 1  ;;  %s2996_s14 = sphi %s3027_s14, %s18_s14  }
  0x11   : > { %p96_p6 = scmp.lt.s32.totalorder %s2996_s14, 3 }
  0x13   : > { %p97_p7 = pnand %p2813_p5, %p96_p6 }
  0x15   : > { %100 = sbr.rel (%p97_p7) target bundleno = 419 (0x1a3), region = 24 }
  0x1c   : > { %s2814_s15 = sshll.u32 %s2809_s0, 1  ;;  %v2999_v0 = vmov 0.0   ;;  %v4615_v1 = vlaneseq  ;;  %v3000_v2 = vmov 1966171168   ;;  %s3001_s20 = smov 15   ;;  %vm285_vm0 = vcmask 1039360  }
  0x1d   : > { %p119_p8 = scmp.lt.s32.totalorder %s2814_s15, 3  ;;  %132 = vst [vmem:[#allocation2] sm:$0x77] %v2999_v0  ;;  %133 = vst [vmem:[#allocation2 + $0x8] sm:$0x77] %v2999_v0  ;;  %v182_v3 = vunpack.c.l.s4 %v3000_v2  ;;  %s3002_s21 = smov 17  }
  0x1e   : > { %134 = vst [vmem:[#allocation2 + $0x10] sm:$0x77] %v2999_v0  ;;  %135 = vst [vmem:[#allocation2 + $0x18] sm:$0x77] %v2999_v0  ;;  %v185_v7 = vshrl.u32 %v4615_v1, 7  ;;  %s3003_s22 = smov 127  }
  0x1f   : > { %s4718_s15 = smov (!%p119_p8, %s2814_s15), 3  ;;  %v183_v6 = vunpack.c.0.s8 %v182_v3  ;;  %s3004_s23 = smov 1   ;;  %vm298_vm3 = vcmask 924672   ;;  %vm210_vm6 = vcmask 138240   ;;  %vm240_vm7 = vcmask 7168  }
  0x20   : > { %s2919_s16 = sshll.u32 %s4718_s15, 3  ;;  %s2820_s24 = sld [smem:[#allocation4 + $0x1]]  ;;  %vm456_vm8 = vcmask 916480   ;;  %vm227_vm9 = vcmask 121856   ;;  %vm386_vm10 = vcmask 130048   ;;  %vm311_vm11 = vcmask 908288  }
  0x21   : > { %s123_s19 = scalar_lea.vmem %s4613_s1, %s2919_s16  ;;  %v3042_v8 = vsub.s32 %v183_v6, %v185_v7  ;;  %s3005_s25 = smov 113  }
  0x22   : > { %v136_v4 = vld [vmem:[%s123_s19] sm:$0x77]  ;;  %v137_v5 = vld [vmem:[%s123_s19 + $0x8] sm:$0x77]  ;;  %s2826_s26 = sld [smem:[#allocation4 + $0x7]]  ;;  %s2830_s27 = sld [smem:[#allocation4 + $0xa]] }
  0x23   : > { %138 = vst [vmem:[#allocation2 + $0x4] sm:$0x77] %v136_v4  ;;  %139 = vst [vmem:[#allocation2 + $0x14] sm:$0x77] %v137_v5  ;;  %s2836_s28 = sld [smem:[#allocation4 + $0x10]]  ;;  %s4616_s29 = smov 111  }
  0x24   : > { %s2841_s30 = sld [smem:[#allocation4 + $0x13]]  ;;  %s4618_s3 = smov 16  }
  0x25   : > { %s2847_s4 = sld [smem:[#allocation4 + $0x19]]  ;;  %s2863_s5 = sld [smem:[#allocation4 + $0x25]] }
  0x26   : > { %v323_v22 = vstv %s2820_s24  ;;  %s3008_s6 = smov 112   ;;  %s2874_s7 = sld [smem:[#allocation4 + $0x2e]] }
  0x27   : > { %s2852_s8 = sld [smem:[#allocation4 + $0x1c]]  ;;  %s2858_s9 = sld [smem:[#allocation4 + $0x22]] }
  0x28   : > { %v347_v29 = vstv %s2826_s26  ;;  %v568_v33 = vstv %s2830_s27  ;;  %s2869_s10 = sld [smem:[#allocation4 + $0x2b]]  ;;  %s2880_s11 = sld [smem:[#allocation4 + $0x34]] }
  0x29   : > { %v592_v42 = vstv %s2836_s28  ;;  %s3216_s12 = sld [smem:[#allocation4 + $0x3d]]  ;;  %s3228_s13 = sld [smem:[#allocation4 + $0x46]] }
  0x2a   : > { %v3044_v9 = vld [vmem:[#allocation2] ss:$4 sm:$0x7]  ;;  %v3046_v10 = vld [vmem:[#allocation2 + $0x10] ss:$4 sm:$0x7]  ;;  %v808_v49 = vstv %s2841_s30 }
  0x2b   : > { %v180_v11 = vcombine.low %v3044_v9, %v3046_v10  ;;  %v3050_v12 = vld [vmem:[#allocation2 + $0x4] ss:$4 sm:$0x7]  ;;  %v3052_v13 = vld [vmem:[#allocation2 + $0x14] ss:$4 sm:$0x7]  ;;  %v324_v23 = vmul.f32 %v323_v22, %v3044_v9  ;;  %v325_v26 = vmul.f32 %v323_v22, %v3046_v10  ;;  %v569_v34 = vmul.f32 %v568_v33, %v3044_v9 }
  0x2c   : > { %v255_v14 = vcombine.low %v3050_v12, %v3052_v13  ;;  %v348_v31 = vmul.f32 %v347_v29, %v3050_v12  ;;  %v349_v32 = vmul.f32 %v347_v29, %v3052_v13  ;;  %v570_v35 = vmul.f32 %v568_v33, %v3046_v10  ;;  %v3106_v61 = vld [vmem:[#allocation2 + $0x1] ss:$4 sm:$0x7]  ;;  %v3108_v62 = vld [vmem:[#allocation2 + $0x11] ss:$4 sm:$0x7] }
  0x2d   : > { %v187_v15 = vrot.slane %v180_v11, %v3042_v8  ;;  %v356_v28 = vcombine.low %v324_v23, %v325_v26  ;;  %v593_v44 = vmul.f32 %v592_v42, %v3050_v12  ;;  %v594_v45 = vmul.f32 %v592_v42, %v3052_v13  ;;  %v3155_v33 = vld [vmem:[#allocation2 + $0x5] ss:$4 sm:$0x7]  ;;  %s3241_s0 = sld [smem:[#allocation4 + $0x4f]]  ;;  %s3252_s16 = sld [smem:[#allocation4 + $0x2]] }
  0x2e   : > { %v262_v16 = vrot.slane %v255_v14, %v3042_v8  ;;  %v426_v37 = vcombine.low %v348_v31, %v349_v32  ;;  %v601_v38 = vcombine.low %v569_v34, %v570_v35  ;;  %v809_v54 = vmul.f32 %v808_v49, %v3044_v9  ;;  %v3157_v34 = vld [vmem:[#allocation2 + $0x15] ss:$4 sm:$0x7]  ;;  %s3254_s17 = sld [smem:[#allocation4 + $0xb]]  ;;  %s3258_s18 = sld [smem:[#allocation4 + $0x14]] }
  0x2f   : > { %v195_v17 = vrot.slane %v187_v15, %v3042_v8  ;;  %v188_v20 = vcombine.high %v187_v15, %v187_v15  ;;  %v363_v30 = vrot.slane %v356_v28, %v3042_v8  ;;  %v670_v52 = vcombine.low %v593_v44, %v594_v45  ;;  %v3176_v45 = vld [vmem:[#allocation2 + $0x6] ss:$4 sm:$0x7]  ;;  %s3260_s19 = sld [smem:[#allocation4 + $0x3]]  ;;  %s3268_s24 = sld [smem:[#allocation4 + $0x15]] }
  0x30   : > { %v270_v18 = vrot.slane %v262_v16, %v3042_v8  ;;  %v263_v25 = vcombine.high %v262_v16, %v262_v16  ;;  %v433_v41 = vrot.slane %v426_v37, %v3042_v8  ;;  %v608_v43 = vrot.slane %v601_v38, %v3042_v8  ;;  %s3276_s26 = sld [smem:[#allocation4 + $0x37]]  ;;  %s3283_s27 = sld [smem:[#allocation4 + $0x4]] }
  0x31   : > { %221 = vrot.lane.b32.xlu1 %v195_v17, %s3001_s20  ;;  %204 = vrot.lane.b32.xlu0 %v195_v17, %s3002_s21  ;;  %v203_v19 = vcombine.high %v195_v17, %v195_v17  ;;  %v202_v21 = vrot.slane %v188_v20, %v3042_v8  ;;  %v364_v36 = vcombine.high %v363_v30, %v363_v30  ;;  %v832_v60 = vstv %s2847_s4  ;;  %s3288_s28 = sld [smem:[#allocation4 + $0xe]]  ;;  %s3290_s30 = sld [smem:[#allocation4]] }
  0x32   : > { %v278_v24 = vcombine.high %v270_v18, %v270_v18  ;;  %v277_v27 = vrot.slane %v263_v25, %v3042_v8  ;;  %v371_v40 = vrot.slane %v363_v30, %v3042_v8  ;;  %v441_v46 = vrot.slane %v433_v41, %v3042_v8  ;;  %s3293_s4 = sld [smem:[#allocation4 + $0x17]] }
  0x33   : > { %v378_v39 = vrot.slane %v364_v36, %v3042_v8  ;;  %v434_v48 = vcombine.high %v433_v41, %v433_v41  ;;  %v609_v51 = vcombine.high %v608_v43, %v608_v43  ;;  %v810_v55 = vmul.f32 %v808_v49, %v3046_v10 }
  0x34   : > { %v379_v47 = vcombine.high %v371_v40, %v371_v40  ;;  %v449_v50 = vcombine.high %v441_v46, %v441_v46  ;;  %v616_v56 = vrot.slane %v608_v43, %v3042_v8  ;;  %v677_v58 = vrot.slane %v670_v52, %v3042_v8 }
  0x35   : > { %279 = vrot.lane.b32.xlu1 %v270_v18, %s3003_s22  ;;  %234 = vrot.lane.b32.xlu0 %v195_v17, %s3004_s23  ;;  %v448_v53 = vrot.slane %v434_v48, %v3042_v8  ;;  %v623_v57 = vrot.slane %v609_v51, %v3042_v8  ;;  %v841_v59 = vcombine.low %v809_v54, %v810_v55  ;;  %v1422_v63 = vstv %s2863_s5  ;;  %s3295_s5 = sld [smem:[#allocation4 + $0x8]] }
  0x36   : > { %v3111_v0 = vmul.f32 %v1422_v63, %v3106_v61  ;;  %v3114_v2 = vmul.f32 %v1422_v63, %v3108_v62  ;;  %v624_v3 = vcombine.high %v616_v56, %v616_v56  ;;  %v678_v4 = vcombine.high %v677_v58, %v677_v58 }
  0x37   : > { %v833_v5 = vmul.f32 %v832_v60, %v3050_v12  ;;  %v834_v6 = vmul.f32 %v832_v60, %v3052_v13  ;;  %v685_v7 = vrot.slane %v677_v58, %v3042_v8  ;;  %v848_v9 = vrot.slane %v841_v59, %v3042_v8 }
  0x38   : > { %v1455_v10 = vcombine.low %v3111_v0, %v3114_v2  ;;  %v692_v14 = vrot.slane %v678_v4, %v3042_v8  ;;  %v1662_v16 = vstv %s2874_s7  ;;  %v1117_v35 = vcombine.low %v3155_v33, %v3157_v34  ;;  %s3302_s7 = sld [smem:[#allocation4 + $0x11]] }
  0x39   : > { %292 = vrot.lane.b32.xlu0 %v270_v18, %s3005_s25  ;;  %208 = vrot.lane.b32.xlu1 %v203_v19, %s3002_s21  ;;  %v693_v11 = vcombine.high %v685_v7, %v685_v7  ;;  %v910_v15 = vcombine.low %v833_v5, %v834_v6  ;;  %v849_v12 = vcombine.high %v848_v9, %v848_v9  ;;  %v1206_v51 = vstv %s2858_s9  ;;  %s3309_s9 = sld [smem:[#allocation4 + $0x40]] }
  0x3a   : > { %v3128_v13 = vmul.f32 %v1662_v16, %v3106_v61  ;;  %v3131_v17 = vmul.f32 %v1662_v16, %v3108_v62  ;;  %v1124_v36 = vrot.slane %v1117_v35, %v3042_v8  ;;  %v1207_v52 = vmul.f32 %v1206_v51, %v3155_v33 }
  0x3b   : > { %v863_v20 = vrot.slane %v849_v12, %v3042_v8  ;;  %v917_v22 = vrot.slane %v910_v15, %v3042_v8  ;;  %v1446_v60 = vstv %s2869_s10  ;;  %v1686_v4 = vstv %s2880_s11  ;;  %s3317_s10 = sld [smem:[#allocation4 + $0x6]]  ;;  %s3319_s11 = sld [smem:[#allocation4 + $0x9]] }
  0x3c   : > { %v1132_v37 = vrot.slane %v1124_v36, %v3042_v8  ;;  %v1125_v38 = vcombine.high %v1124_v36, %v1124_v36 }
  0x3d   : > { %225 = vrot.lane.b32.xlu1 %v203_v19, %s3001_s20  ;;  %206 = vrot.lane.b32.xlu0 %v202_v21, %s3002_s21  ;;  %v918_v26 = vcombine.high %v917_v22, %v917_v22 }
  0x3e   : > { %v1140_v41 = vcombine.high %v1132_v37, %v1132_v37  ;;  %v1139_v42 = vrot.slane %v1125_v38, %v3042_v8 }
  0x3f   : > { %v932_v28 = vrot.slane %v918_v26, %v3042_v8 }
  0x41   : > { %236 = vrot.lane.b32.xlu1 %v202_v21, %s3004_s23  ;;  %223 = vrot.lane.b32.xlu0 %v202_v21, %s3001_s20  ;;  %v856_v21 = vrot.slane %v848_v9, %v3042_v8 }
  0x43   : > { %v864_v25 = vcombine.high %v856_v21, %v856_v21 }
  0x45   : > { %283 = vrot.lane.b32.xlu1 %v278_v24, %s3003_s22  ;;  %238 = vrot.lane.b32.xlu0 %v203_v19, %s3004_s23  ;;  %v1049_v19 = vcombine.low %v3106_v61, %v3108_v62 }
  0x47   : > { %v1056_v23 = vrot.slane %v1049_v19, %v3042_v8 }
  0x49   : > { %294 = vrot.lane.b32.xlu1 %v277_v27, %s3005_s25  ;;  %281 = vrot.lane.b32.xlu0 %v277_v27, %s3003_s22  ;;  %v1057_v29 = vcombine.high %v1056_v23, %v1056_v23  ;;  %v1064_v31 = vrot.slane %v1056_v23, %v3042_v8 }
  0x4b   : > { %v1071_v30 = vrot.slane %v1057_v29, %v3042_v8  ;;  %v1072_v32 = vcombine.high %v1064_v31, %v1064_v31 }
  0x4d   : > { %305 = vrot.lane.b32.xlu1 %v270_v18, %s4616_s29  ;;  %296 = vrot.lane.b32.xlu0 %v278_v24, %s3005_s25  ;;  %v1695_v18 = vcombine.low %v3128_v13, %v3131_v17 }
  0x51   : > { %309 = vrot.lane.b32.xlu1 %v278_v24, %s4616_s29  ;;  %307 = vrot.lane.b32.xlu0 %v277_v27, %s4616_s29  ;;  %v925_v24 = vrot.slane %v917_v22, %v3042_v8  ;;  %v2060_v22 = vstv %s3216_s12  ;;  %s3333_s12 = sld [smem:[#allocation4 + $0x12]] }
  0x53   : > { %v933_v27 = vcombine.high %v925_v24, %v925_v24 }
  0x55   : > { %382 = vrot.lane.b32.xlu1 %v378_v39, %s4618_s3  ;;  %380 = vrot.lane.b32.xlu0 %v371_v40, %s4618_s3  ;;  %v1182_v39 = vstv %s2852_s8  ;;  %s3304_s8 = sld [smem:[#allocation4 + $0x1a]] }
  0x56   : > { %v1183_v40 = vmul.f32 %v1182_v39, %v3106_v61  ;;  %v1184_v43 = vmul.f32 %v1182_v39, %v3108_v62  ;;  %v1447_v61 = vmul.f32 %v1446_v60, %v3155_v33  ;;  %v1448_v62 = vmul.f32 %v1446_v60, %v3157_v34 }
  0x58   : > { %v1215_v44 = vcombine.low %v1183_v40, %v1184_v43 }
  0x59   : > { %450 = vrot.lane.b32.xlu1 %v441_v46, %s3008_s6  ;;  %384 = vrot.lane.b32.xlu0 %v379_v47, %s4618_s3  ;;  %v3178_v46 = vld [vmem:[#allocation2 + $0x16] ss:$4 sm:$0x7] }
  0x5a   : > { %v1222_v47 = vrot.slane %v1215_v44, %v3042_v8  ;;  %v1971_v48 = vcombine.low %v3176_v45, %v3178_v46 }
  0x5c   : > { %v1223_v49 = vcombine.high %v1222_v47, %v1222_v47  ;;  %v3194_v55 = vrot.slane %v1222_v47, %v3042_v8 }
  0x5d   : > { %454 = vrot.lane.b32.xlu1 %v449_v50, %s3008_s6  ;;  %452 = vrot.lane.b32.xlu0 %v448_v53, %s3008_s6  ;;  %v1978_v50 = vrot.slane %v1971_v48, %v3042_v8  ;;  %v1208_v53 = vmul.f32 %v1206_v51, %v3157_v34 }
  0x5e   : > { %v1237_v54 = vrot.slane %v1223_v49, %v3042_v8 }
  0x5f   : > { %v3203_v58 = vrot.slane %v1978_v50, %v3042_v8  ;;  %v1284_v59 = vcombine.low %v1207_v52, %v1208_v53 }
  0x61   : > { %627 = vrot.lane.b32.xlu1 %v623_v57, %s4618_s3  ;;  %625 = vrot.lane.b32.xlu0 %v616_v56, %s4618_s3  ;;  %v1979_v56 = vcombine.high %v1978_v50, %v1978_v50  ;;  %4634 = vst [vmem:[#allocation7_spill] sm:$0xff] %v3203_v58  ;;  %v3213_v63 = vcombine.high %v3203_v58, %v3203_v58 }
  0x63   : > { %v3200_v57 = vrot.slane %v1979_v56, %v3042_v8  ;;  %4635 = vst [vmem:[#allocation8_spill] sm:$0xff] %v3213_v63 }
  0x65   : > { %694 = vrot.lane.b32.xlu1 %v685_v7, %s3008_s6  ;;  %629 = vrot.lane.b32.xlu0 %v624_v3, %s4618_s3  ;;  %4633 = vst [vmem:[#allocation6_spill] sm:$0xff] %v3200_v57  ;;  %v1291_v3 = vrot.slane %v1284_v59, %v3042_v8  ;;  %v1524_v7 = vcombine.low %v1447_v61, %v1448_v62  ;;  %v3325_v61 = vld [vmem:[#allocation2 + $0x2] ss:$4 sm:$0x7] }
  0x66   : > { %v3327_v62 = vld [vmem:[#allocation2 + $0x12] ss:$4 sm:$0x7] }
  0x67   : > { %v1292_v9 = vcombine.high %v1291_v3, %v1291_v3  ;;  %v1531_v12 = vrot.slane %v1524_v7, %v3042_v8 }
  0x69   : > { %698 = vrot.lane.b32.xlu1 %v693_v11, %s3008_s6  ;;  %696 = vrot.lane.b32.xlu0 %v692_v14, %s3008_s6  ;;  %v1687_v11 = vmul.f32 %v1686_v4, %v3155_v33  ;;  %v1688_v14 = vmul.f32 %v1686_v4, %v3157_v34  ;;  %v1306_v19 = vrot.slane %v1292_v9, %v3042_v8  ;;  %v343_v4 = vstv %s3317_s10  ;;  %s4124_s10 = sld [smem:[#allocation4 + $0x23]] }
  0x6a   : > { %v1539_v26 = vrot.slane %v1531_v12, %v3042_v8 }
  0x6c   : > { %v1547_v36 = vcombine.high %v1539_v26, %v1539_v26 }
  0x6d   : > { %867 = vrot.lane.b32.xlu1 %v863_v20, %s4618_s3  ;;  %865 = vrot.lane.b32.xlu0 %v856_v21, %s4618_s3  ;;  %v1299_v20 = vrot.slane %v1291_v3, %v3042_v8  ;;  %v1764_v21 = vcombine.low %v1687_v11, %v1688_v14  ;;  %v2036_v11 = vstv %s3276_s26  ;;  %s3376_s26 = sld [smem:[#allocation4 + $0x16]] }
  0x6f   : > { %v1771_v29 = vrot.slane %v1764_v21, %v3042_v8  ;;  %v335_v21 = vstv %s3283_s27  ;;  %s3378_s27 = sld [smem:[#allocation4 + $0x49]] }
  0x71   : > { %934 = vrot.lane.b32.xlu1 %v925_v24, %s3008_s6  ;;  %869 = vrot.lane.b32.xlu0 %v864_v25, %s4618_s3  ;;  %v3249_v25 = vand.u32 127, %v4615_v1  ;;  %v1772_v40 = vcombine.high %v1771_v29, %v1771_v29 }
  0x73   : > { %v3279_v35 = vadd.s32 128, %v3249_v25  ;;  %v147_v43 = vand.u32 15, %v3249_v25  ;;  %v1786_v53 = vrot.slane %v1772_v40, %v3042_v8 }
  0x75   : > { %938 = vrot.lane.b32.xlu1 %v933_v27, %s3008_s6  ;;  %936 = vrot.lane.b32.xlu0 %v932_v28, %s3008_s6  ;;  %v1307_v27 = vcombine.high %v1299_v20, %v1299_v20  ;;  %v1532_v28 = vcombine.high %v1531_v12, %v1531_v12  ;;  %v154_v48 = vand.u32 15, %v3279_v35  ;;  %vm3344_vm1 = vcmp.ne.s32.totalorder %v147_v43, 15 }
  0x76   : > { %vm3433_vm4 = vcmp.ne.s32.totalorder %v147_v43, 0  ;;  %v2516_v43 = vstv %s3378_s27  ;;  %s3477_s27 = sld [smem:[#allocation4 + $0x2f]] }
  0x77   : > { %v1546_v39 = vrot.slane %v1532_v28, %v3042_v8  ;;  %vm3350_vm2 = vcmp.ne.s32.totalorder %v154_v48, 15  ;;  %vm3439_vm5 = vcmp.ne.s32.totalorder %v154_v48, 0  ;;  %v2518_v13 = vmul.f32 %v2516_v43, %v3327_v62 }
  0x79   : > { %1075 = vrot.lane.b32.xlu1 %v1071_v30, %s3002_s21  ;;  %1073 = vrot.lane.b32.xlu0 %v1064_v31, %s3002_s21 }
  0x7d   : > { %1085 = vrot.lane.b32.xlu1 %v1064_v31, %s3001_s20  ;;  %1077 = vrot.lane.b32.xlu0 %v1072_v32, %s3002_s21 }
  0x81   : > { %1089 = vrot.lane.b32.xlu1 %v1072_v32, %s3001_s20  ;;  %1087 = vrot.lane.b32.xlu0 %v1071_v30, %s3001_s20 }
  0x85   : > { %1099 = vrot.lane.b32.xlu1 %v1071_v30, %s3004_s23  ;;  %1097 = vrot.lane.b32.xlu0 %v1064_v31, %s3004_s23  ;;  %v2061_v30 = vmul.f32 %v2060_v22, %v3176_v45  ;;  %v2062_v31 = vmul.f32 %v2060_v22, %v3178_v46 }
  0x89   : > { %1141 = vrot.lane.b32.xlu1 %v1132_v37, %s3003_s22  ;;  %1101 = vrot.lane.b32.xlu0 %v1072_v32, %s3004_s23  ;;  %v2300_v32 = vstv %s3228_s13  ;;  %s3340_s13 = sld [smem:[#allocation4 + $0xd]] }
  0x8a   : > { %v2302_v38 = vmul.f32 %v2300_v32, %v3178_v46 }
  0x8d   : > { %1145 = vrot.lane.b32.xlu1 %v1140_v41, %s3003_s22  ;;  %1143 = vrot.lane.b32.xlu0 %v1139_v42, %s3003_s22 }
  0x91   : > { %1155 = vrot.lane.b32.xlu1 %v1139_v42, %s3005_s25  ;;  %1153 = vrot.lane.b32.xlu0 %v1132_v37, %s3005_s25 }
  0x95   : > { %1165 = vrot.lane.b32.xlu1 %v1132_v37, %s4616_s29  ;;  %1157 = vrot.lane.b32.xlu0 %v1140_v41, %s3005_s25  ;;  %v2301_v37 = vmul.f32 %v2300_v32, %v3176_v45 }
  0x97   : > { %v2378_v49 = vcombine.low %v2301_v37, %v2302_v38  ;;  %v2037_v37 = vmul.f32 %v2036_v11, %v3325_v61  ;;  %v2038_v38 = vmul.f32 %v2036_v11, %v3327_v62 }
  0x99   : > { %1169 = vrot.lane.b32.xlu1 %v1140_v41, %s4616_s29  ;;  %1167 = vrot.lane.b32.xlu0 %v1139_v42, %s4616_s29  ;;  %v2138_v41 = vcombine.low %v2061_v30, %v2062_v31  ;;  %v2540_v42 = vstv %s3241_s0  ;;  %v2385_v12 = vrot.slane %v2378_v49, %v3042_v8  ;;  %v3358_v30 = vld [vmem:[#allocation2 + $0x14] ss:$4 sm:$0x3]  ;;  %v1903_v31 = vcombine.low %v3325_v61, %v3327_v62  ;;  %s3362_s0 = sld [smem:[#allocation4 + $0xf]] }
  0x9a   : > { %v2541_v50 = vmul.f32 %v2540_v42, %v3176_v45  ;;  %v2542_v51 = vmul.f32 %v2540_v42, %v3178_v46  ;;  %v319_v49 = vstv %s3290_s30  ;;  %v4620_v46 = vstv %s3319_s11  ;;  %s3525_s29 = sld [smem:[#allocation4 + $0x27]] }
  0x9b   : > { %v2145_v56 = vrot.slane %v2138_v41, %v3042_v8  ;;  %v1910_v1 = vrot.slane %v1903_v31, %v3042_v8  ;;  %v3391_v41 = vrot.slane %v2385_v12, %v3042_v8  ;;  %s2855_s30 = sld [smem:[#allocation4 + $0x1f]] }
  0x9d   : > { %1241 = vrot.lane.b32.xlu1 %v1237_v54, %s4618_s3  ;;  %1239 = vrot.lane.b32.xlu0 %v3194_v55, %s4618_s3  ;;  %v1779_v54 = vrot.slane %v1771_v29, %v3042_v8  ;;  %v2153_v28 = vrot.slane %v2145_v56, %v3042_v8  ;;  %v2146_v29 = vcombine.high %v2145_v56, %v2145_v56  ;;  %v2276_v56 = vstv %s3309_s9  ;;  %s3399_s9 = sld [smem:[#allocation4 + $0x18]] }
  0x9e   : > { %v2277_v31 = vmul.f32 %v2276_v56, %v3325_v61  ;;  %v3451_v45 = vrot.slane %v1910_v1, %v3042_v8  ;;  %s3527_s3 = sld [smem:[#allocation4 + $0x30]] }
  0x9f   : > { %v1787_v14 = vcombine.high %v1779_v54, %v1779_v54  ;;  %v2161_v11 = vcombine.high %v2153_v28, %v2153_v28  ;;  %v2160_v42 = vrot.slane %v2146_v29, %v3042_v8 }
  0xa1   : > { %1997 = vrot.lane.b32.xlu1 %v3200_v57, %s3003_s22  ;;  %1995 = vrot.lane.b32.xlu0 %v3203_v58, %s3003_s22 }
  0xa3   : > { %v3218_v5 = vpop.permute.xlu1 %221  ;;  %v3220_v6 = vpop.permute.xlu0 %204 }
  0xa5   : > { %2007 = vrot.lane.b32.xlu1 %v3203_v58, %s3005_s25  ;;  %1999 = vrot.lane.b32.xlu0 %v3213_v63, %s3003_s22  ;;  %s3266_s22 = sld [smem:[#allocation4 + $0xc]] }
  0xa7   : > { %v3230_v15 = vpop.permute.xlu1 %279  ;;  %v3232_v16 = vpop.permute.xlu0 %234 }
  0xa9   : > { %2011 = vrot.lane.b32.xlu1 %v3213_v63, %s3005_s25  ;;  %2009 = vrot.lane.b32.xlu0 %v3200_v57, %s3005_s25  ;;  %s3274_s25 = sld [smem:[#allocation4 + $0x5]] }
  0xab   : > { %v3244_v23 = vpop.permute.xlu0 %292  ;;  %v3246_v24 = vpop.permute.xlu1 %208 }
  0xad   : > { %1310 = vrot.lane.b32.xlu1 %v1306_v19, %s3008_s6  ;;  %1308 = vrot.lane.b32.xlu0 %v1299_v20, %s3008_s6  ;;  %v2618_v19 = vcombine.low %v2541_v50, %v2542_v51  ;;  %v3337_v20 = vld [vmem:[#allocation2 + $0x4] ss:$4 sm:$0x3]  ;;  %v2386_v51 = vcombine.high %v2385_v12, %v2385_v12  ;;  %v2278_v12 = vmul.f32 %v2276_v56, %v3327_v62 }
  0xae   : > { %v3374_v50 = vmul.f32 %v335_v21, %v3337_v20 }
  0xaf   : > { %v3270_v33 = vpop.permute.xlu1 %225  ;;  %v3272_v34 = vpop.permute.xlu0 %206  ;;  %v339_v9 = vstv %s3274_s25  ;;  %v2309_v56 = vcombine.low %v2277_v31, %v2278_v12  ;;  %v1702_v31 = vrot.slane %v1695_v18, %v3042_v8  ;;  %s3487_s25 = sld [smem:[#allocation4 + $0x1e]]  ;;  %v2517_v12 = vmul.f32 %v2516_v43, %v3325_v61 }
  0xb1   : > { %1548 = vrot.lane.b32.xlu1 %v1539_v26, %s3008_s6  ;;  %1312 = vrot.lane.b32.xlu0 %v1307_v27, %s3008_s6  ;;  %v584_v27 = vstv %s3288_s28  ;;  %s2857_s28 = sld [smem:[#allocation4 + $0x21]] }
  0xb3   : > { %v3298_v44 = vpop.permute.xlu1 %236  ;;  %v3300_v47 = vpop.permute.xlu0 %223 }
  0xb5   : > { %1552 = vrot.lane.b32.xlu1 %v1547_v36, %s3008_s6  ;;  %1550 = vrot.lane.b32.xlu0 %v1546_v39, %s3008_s6  ;;  %v2400_v36 = vrot.slane %v2386_v51, %v3042_v8 }
  0xb7   : > { %v284_v3 = vpop.permute.xlu1 %283  ;;  %v3330_v7 = vpop.permute.xlu0 %238 }
  0xb9   : > { %1790 = vrot.lane.b32.xlu1 %v1786_v53, %s3008_s6  ;;  %1788 = vrot.lane.b32.xlu0 %v1779_v54, %s3008_s6  ;;  %v2625_v53 = vrot.slane %v2618_v19, %v3042_v8  ;;  %v3382_v54 = vmul.f32 %v335_v21, %v3358_v30  ;;  %v2069_v21 = vcombine.low %v2037_v37, %v2038_v38  ;;  %v580_v38 = vstv %s3340_s13  ;;  %s3459_s13 = sld [smem:[#allocation4 + $0x1d]] }
  0xba   : > { %v3454_v35 = vmul.f32 %v580_v38, %v3337_v20  ;;  %v3457_v48 = vmul.f32 %v580_v38, %v3358_v30  ;;  %v3517_v38 = vrot.slane %v1702_v31, %v3042_v8 }
  0xbb   : > { %v3368_v39 = vpop.permute.xlu1 %294  ;;  %v282_v40 = vpop.permute.xlu0 %281  ;;  %v2626_v19 = vcombine.high %v2625_v53, %v2625_v53  ;;  %v3405_v37 = vrot.slane %v2625_v53, %v3042_v8  ;;  %v2076_v25 = vrot.slane %v2069_v21, %v3042_v8 }
  0xbc   : > { %v286_v60 = vsel %vm285_vm0, %v3230_v15, %v282_v40  ;;  %v1462_v15 = vrot.slane %v1455_v10, %v3042_v8 }
  0xbd   : > { %2162 = vrot.lane.b32.xlu1 %v2153_v28, %s3008_s6  ;;  %1792 = vrot.lane.b32.xlu0 %v1787_v14, %s3008_s6  ;;  %v287_v14 = vsel %vm285_vm0, %v282_v40, %v284_v3  ;;  %v2401_v3 = vcombine.high %v3391_v41, %v3391_v41  ;;  %v1911_v40 = vcombine.high %v1910_v1, %v1910_v1  ;;  %v3420_v53 = vsel %vm3344_vm1, %v286_v60, 0.0 }
  0xbe   : > { %v3424_v0 = vsel %vm3350_vm2, %v287_v14, 0.0  ;;  %v2641_v2 = vcombine.high %v3405_v37, %v3405_v37  ;;  %v3429_v10 = vrot.slane %v2626_v19, %v3042_v8  ;;  %v4643_v60 = vmov 0 }
  0xbf   : > { %v3397_v28 = vpop.permute.xlu1 %305  ;;  %v297_v29 = vpop.permute.xlu0 %296  ;;  %v4644_v60 = vsel %vm3439_vm5, 4294967295, %v4643_v60  ;;  %v820_v19 = vstv %s3376_s26  ;;  %v1463_v51 = vcombine.high %v1462_v15, %v1462_v15  ;;  %v340_v32 = vmul.f32 %v339_v9, %v3420_v53  ;;  %s3475_s26 = sld [smem:[#allocation4 + $0x26]] }
  0xc0   : > { %4645 = vst [vmem:[#allocation10_spill] sm:$0xff] %v4644_v60  ;;  %v341_v21 = vmul.f32 %v339_v9, %v3424_v0  ;;  %v3469_v1 = vrot.slane %v1911_v40, %v3042_v8  ;;  %v3482_v9 = vmul.f32 %v820_v19, %v3337_v20  ;;  %v1703_v40 = vcombine.high %v1702_v31, %v1702_v31 }
  0xc1   : > { %2166 = vrot.lane.b32.xlu1 %v2161_v11, %s3008_s6  ;;  %2164 = vrot.lane.b32.xlu0 %v2160_v42, %s3008_s6  ;;  %v4640_v42 = vmov 0  ;;  %v2077_v59 = vcombine.high %v2076_v25, %v2076_v25  ;;  %v3499_v20 = vcombine.high %v3451_v45, %v3451_v45  ;;  %v3504_v61 = vrot.slane %v1463_v51, %v3042_v8 }
  0xc2   : > { %v4641_v42 = vsel %vm3433_vm4, 4294967295, %v4640_v42  ;;  %v3507_v62 = vrot.slane %v1462_v15, %v3042_v8  ;;  %v397_v43 = vcombine.low %v340_v32, %v341_v21  ;;  %v3523_v51 = vrot.slane %v2076_v25, %v3042_v8 }
  0xc3   : > { %4642 = vst [vmem:[#allocation9_spill] sm:$0xff] %v4641_v42  ;;  %v3443_v11 = vpop.permute.xlu1 %309  ;;  %v3445_v14 = vpop.permute.xlu0 %307  ;;  %v2549_v32 = vcombine.low %v2517_v12, %v2518_v13  ;;  %v3534_v21 = vrot.slane %v1703_v40, %v3042_v8  ;;  %v3537_v25 = vrot.slane %v2077_v59, %v3042_v8  ;;  %v211_v40 = vsel %vm210_vm6, %v3220_v6, %v3272_v34 }
  0xc4   : > { %v3554_v59 = vrot.slane %v397_v43, %v3042_v8 }
  0xc5   : > { %2404 = vrot.lane.b32.xlu1 %v2400_v36, %s3008_s6  ;;  %2402 = vrot.lane.b32.xlu0 %v3391_v41, %s3008_s6  ;;  %v3485_v36 = vmul.f32 %v820_v19, %v3358_v30  ;;  %v2316_v41 = vrot.slane %v2309_v56, %v3042_v8  ;;  %v299_v19 = vsel %vm298_vm3, %v3244_v23, %v3368_v39 }
  0xc6   : > { %v300_v56 = vsel %vm298_vm3, %v3368_v39, %v297_v29  ;;  %v3544_v12 = vsel %vm3433_vm4, %v299_v19, 0.0  ;;  %v2556_v15 = vrot.slane %v2549_v32, %v3042_v8  ;;  %v212_v32 = vsel %vm210_vm6, %v3272_v34, %v3246_v24 }
  0xc7   : > { %v3491_v17 = vpop.permute.xlu1 %382  ;;  %v3493_v18 = vpop.permute.xlu0 %380  ;;  %v2317_v23 = vcombine.high %v2316_v41, %v2316_v41  ;;  %v3540_v31 = vrot.slane %v2316_v41, %v3042_v8  ;;  %v3548_v13 = vsel %vm3439_vm5, %v300_v56, 0.0  ;;  %v344_v6 = vmul.f32 %v343_v4, %v3544_v12 }
  0xc8   : > { %v228_v41 = vsel %vm227_vm9, %v3218_v5, %v3300_v47  ;;  %v3610_v5 = vsel %vm3433_vm4, %v211_v40, 0.0  ;;  %v229_v40 = vsel %vm227_vm9, %v3300_v47, %v3270_v33 }
  0xc9   : > { %2642 = vrot.lane.b32.xlu1 %v3405_v37, %s3008_s6  ;;  %2406 = vrot.lane.b32.xlu0 %v2401_v3, %s3008_s6  ;;  %v3571_v43 = vrot.slane %v2317_v23, %v3042_v8  ;;  %v585_v37 = vmul.f32 %v584_v27, %v3420_v53  ;;  %v241_v3 = vsel %vm240_vm7, %v3232_v16, %v3298_v44 }
  0xca   : > { %v242_v16 = vsel %vm240_vm7, %v3298_v44, %v3330_v7  ;;  %v3622_v7 = vsel %vm3433_vm4, %v241_v3, 0.0  ;;  %v320_v47 = vmul.f32 %v319_v49, %v3610_v5 }
  0xcb   : > { %v451_v39 = vpop.permute.xlu1 %450  ;;  %v3529_v29 = vpop.permute.xlu0 %384  ;;  %4646 = vst [vmem:[#allocation11_spill] sm:$0xff] %v3571_v43 }
  0xcd   : > { %2646 = vrot.lane.b32.xlu1 %v2641_v2, %s3008_s6  ;;  %2644 = vrot.lane.b32.xlu0 %v3429_v10, %s3008_s6  ;;  %v586_v2 = vmul.f32 %v584_v27, %v3424_v0  ;;  %v345_v10 = vmul.f32 %v343_v4, %v3548_v13  ;;  %v405_v4 = vcombine.high %v3554_v59, %v3554_v59  ;;  %s3761_s6 = sld [smem:[#allocation4 + $0x29]] }
  0xcf   : > { %v455_v56 = vpop.permute.xlu1 %454  ;;  %v453_v23 = vpop.permute.xlu0 %452  ;;  %v419_v3 = vrot.slane %v405_v4, %v3042_v8 }
  0xd0   : > { %v457_v27 = vsel %vm456_vm8, %v451_v39, %v453_v23  ;;  %v458_v19 = vsel %vm456_vm8, %v453_v23, %v455_v56  ;;  %v2557_v39 = vcombine.high %v2556_v15, %v2556_v15  ;;  %v641_v56 = vcombine.low %v585_v37, %v586_v2 }
  0xd1   : > { %v461_v30 = vadd.f32 %v457_v27, %v344_v6  ;;  %v462_v52 = vadd.f32 %v458_v19, %v345_v10  ;;  %1929 = vrot.lane.b32.xlu1 %v3469_v1, %s3002_s21  ;;  %1927 = vrot.lane.b32.xlu0 %v3451_v45, %s3002_s21  ;;  %v3614_v19 = vsel %vm3439_vm5, %v212_v32, 0.0  ;;  %v3629_v23 = vsel %vm3344_vm1, %v228_v41, 0.0 }
  0xd2   : > { %v3632_v37 = vrot.slane %v2556_v15, %v3042_v8  ;;  %v321_v15 = vmul.f32 %v319_v49, %v3614_v19  ;;  %v3658_v2 = vrot.slane %v641_v56, %v3042_v8  ;;  %v3664_v49 = vmul.f32 %v4620_v46, %v3610_v5 }
  0xd3   : > { %v467_v6 = vcombine.low %v461_v30, %v462_v52  ;;  %v3616_v10 = vpop.permute.xlu1 %627  ;;  %v3618_v44 = vpop.permute.xlu0 %625  ;;  %v3636_v52 = vsel %vm3439_vm5, %v242_v16, 0.0  ;;  %v412_v30 = vrot.slane %v3554_v59, %v3042_v8  ;;  %v3653_v59 = vrot.slane %v2557_v39, %v3042_v8 }
  0xd4   : > { %4647 = vst [vmem:[#allocation12_spill] sm:$0xff] %v3632_v37  ;;  %v3670_v39 = vsel %vm3350_vm2, %v229_v40, 0.0  ;;  %v4650_v41 = vstv %s3260_s19  ;;  %v4652_v46 = vstv %s3293_s4  ;;  %v423_v58 = vadd.f32 %v419_v3, %v3382_v54  ;;  %s2889_s19 = sld [smem:[#allocation4 + $0x3b]]  ;;  %s4111_s4 = sld [smem:[#allocation4 + $0x2a]] }
  0xd5   : > { %v474_v33 = vrot.slane %v467_v6, %v3042_v8  ;;  %1939 = vrot.lane.b32.xlu1 %v3451_v45, %s3001_s20  ;;  %1931 = vrot.lane.b32.xlu0 %v3499_v20, %s3002_s21  ;;  %4648 = vst [vmem:[#allocation13_spill] sm:$0xff] %v3653_v59  ;;  %v4649_v6 = vstv %s3252_s16  ;;  %v332_v34 = vmul.f32 %v4650_v41, %v3622_v7  ;;  %v4653_v40 = vmov %v4652_v46  ;;  %s3759_s21 = sld [smem:[#allocation4 + $0x20]] }
  0xd6   : > { %v328_v56 = vmul.f32 %v4649_v6, %v3629_v23  ;;  %v825_v57 = vmul.f32 %v4652_v46, %v3420_v53  ;;  %v422_v63 = vadd.f32 %v412_v30, %v3374_v50  ;;  %v826_v6 = vmul.f32 %v4653_v40, %v3424_v0 }
  0xd7   : > { %v475_v32 = vcombine.high %v474_v33, %v474_v33  ;;  %v482_v27 = vrot.slane %v474_v33, %v3042_v8  ;;  %v695_v4 = vpop.permute.xlu1 %694  ;;  %v3666_v16 = vpop.permute.xlu0 %629  ;;  %v4651_v33 = vmov %v4650_v41  ;;  %v387_v41 = vsel %vm386_vm10, %v3493_v18, %v3491_v17 }
  0xd8   : > { %v333_v24 = vmul.f32 %v4651_v33, %v3636_v52  ;;  %v4654_v46 = vstv %s3362_s0  ;;  %v649_v30 = vcombine.high %v3658_v2, %v3658_v2  ;;  %v388_v0 = vsel %vm386_vm10, %v3491_v17, %v3529_v29  ;;  %s4132_s0 = sld [smem:[#allocation4 + $0x4e]] }
  0xd9   : > { %v489_v37 = vrot.slane %v475_v32, %v3042_v8  ;;  %1943 = vrot.lane.b32.xlu1 %v3499_v20, %s3001_s20  ;;  %1941 = vrot.lane.b32.xlu0 %v3469_v1, %s3001_s20  ;;  %v589_v50 = vmul.f32 %v4654_v46, %v3544_v12  ;;  %v4655_v54 = vmov %v4654_v46  ;;  %v492_v3 = vadd.f32 %v482_v27, %v422_v63  ;;  %s4658_s20 = smov 16  }
  0xda   : > { %v590_v53 = vmul.f32 %v4655_v54, %v3548_v13  ;;  %v312_v40 = vsel %vm311_vm11, %v3397_v28, %v3445_v14  ;;  %v313_v46 = vsel %vm311_vm11, %v3445_v14, %v3443_v11  ;;  %v391_v60 = vadd.f32 %v387_v41, %v320_v47 }
  0xdb   : > { %v493_v18 = vadd.f32 %v489_v37, %v423_v58  ;;  %v699_v32 = vpop.permute.xlu1 %698  ;;  %v697_v33 = vpop.permute.xlu0 %696  ;;  %v4656_v58 = vstv %s3252_s16  ;;  %v881_v37 = vcombine.low %v825_v57, %v826_v6  ;;  %v392_v28 = vadd.f32 %v388_v0, %v321_v15  ;;  %s2920_s16 = sshll.u32 %s4718_s15, 5  ;;  %s4335_s15 = sld [smem:[#allocation4 + $0x48]] }
  0xdc   : > { %v700_v54 = vsel %vm456_vm8, %v695_v4, %v697_v33  ;;  %v701_v59 = vsel %vm456_vm8, %v697_v33, %v699_v32  ;;  %v329_v29 = vmul.f32 %v4656_v58, %v3670_v39  ;;  %v4657_v27 = vstv %s3319_s11  ;;  %s4128_s11 = sld [smem:[#allocation4 + $0x43]] }
  0xdd   : > { %v496_v43 = vcombine.low %v492_v3, %v493_v18  ;;  %v704_v17 = vadd.f32 %v700_v54, %v589_v50  ;;  %v705_v63 = vadd.f32 %v701_v59, %v590_v53  ;;  %1953 = vrot.lane.b32.xlu1 %v3469_v1, %s3004_s23  ;;  %v566_v42 = vmul.f32 %v4657_v27, %v3614_v19 }
  0xde   : > { %1951 = vrot.lane.b32.xlu0 %v3451_v45, %s3004_s23  ;;  %v3728_v11 = vsel %vm3344_vm1, %v312_v40, 0.0  ;;  %v393_v14 = vadd.f32 %v332_v34, %v328_v56  ;;  %v656_v15 = vrot.slane %v3658_v2, %v3042_v8  ;;  %v663_v4 = vrot.slane %v649_v30, %v3042_v8 }
  0xdf   : > { %v503_v1 = vrot.slane %v496_v43, %v3042_v8  ;;  %v710_v47 = vcombine.low %v704_v17, %v705_v63  ;;  %v3731_v59 = vpop.permute.xlu1 %867  ;;  %v3733_v57 = vpop.permute.xlu0 %865  ;;  %v3740_v45 = vsel %vm3350_vm2, %v313_v46, 0.0  ;;  %v394_v6 = vadd.f32 %v333_v24, %v329_v29 }
  0xe0   : > { %v463_v41 = vadd.f32 %v393_v14, %v391_v60  ;;  %v4659_v50 = vcombine.high %v3194_v55, %v3194_v55  ;;  %v4660_v2 = vstv %s3254_s17  ;;  %v3752_v30 = vrot.slane %v881_v37, %v3042_v8 }
  0xe1   : > { %v504_v34 = vcombine.high %v503_v1, %v503_v1  ;;  %v511_v56 = vrot.slane %v503_v1, %v3042_v8  ;;  %v717_v43 = vrot.slane %v710_v47, %v3042_v8  ;;  %v573_v53 = vmul.f32 %v4660_v2, %v3629_v23 }
  0xe2   : > { %1243 = vrot.lane.b32.xlu1 %v4659_v50, %s4658_s20  ;;  %v4661_v60 = vstv %s3295_s5  ;;  %v464_v0 = vadd.f32 %v394_v6, %v392_v28  ;;  %1955 = vrot.lane.b32.xlu0 %v3499_v20, %s3004_s23  ;;  %v4662_v46 = vstv %s3266_s22  ;;  %v666_v63 = vadd.f32 %v656_v15, %v3454_v35  ;;  %s3838_s23 = sld [smem:[#allocation4 + $0x32]]  ;;  %s2900_s22 = sld [smem:[#allocation4 + $0x44]] }
  0xe3   : > { %v352_v24 = vmul.f32 %v4661_v60, %v3728_v11  ;;  %v518_v55 = vrot.slane %v504_v34, %v3042_v8  ;;  %v521_v3 = vadd.f32 %v511_v56, %v463_v41  ;;  %v718_v18 = vcombine.high %v717_v43, %v717_v43  ;;  %v935_v33 = vpop.permute.xlu1 %934  ;;  %v3765_v40 = vpop.permute.xlu0 %869  ;;  %s4115_s5 = sld [smem:[#allocation4 + $0x33]] }
  0xe4   : > { %v725_v32 = vrot.slane %v717_v43, %v3042_v8  ;;  %v577_v54 = vmul.f32 %v4662_v46, %v3622_v7  ;;  %v4663_v20 = vmov %v4661_v60  ;;  %v667_v58 = vadd.f32 %v663_v4, %v3457_v48 }
  0xe5   : > { %v353_v17 = vmul.f32 %v4663_v20, %v3740_v45  ;;  %v522_v29 = vadd.f32 %v518_v55, %v464_v0  ;;  %v523_v37 = vadd.f32 %v521_v3, %v352_v24  ;;  %v631_v28 = vsel %vm386_vm10, %v3618_v44, %v3616_v10 }
  0xe6   : > { %v732_v27 = vrot.slane %v718_v18, %v3042_v8  ;;  %1481 = vrot.lane.b32.xlu1 %v3504_v61, %s4658_s20  ;;  %v4664_v14 = vmov %v4662_v46  ;;  %v889_v47 = vcombine.high %v3752_v30, %v3752_v30  ;;  %1479 = vrot.lane.b32.xlu0 %v3507_v62, %s4658_s20  ;;  %v4665_v35 = vstv %s3399_s9  ;;  %s4139_s9 = sld [smem:[#allocation4 + $0x4c]] }
  0xe7   : > { %v578_v1 = vmul.f32 %v4664_v14, %v3636_v52  ;;  %v829_v48 = vmul.f32 %v4665_v35, %v3544_v12  ;;  %v4666_v15 = vmov %v4665_v35  ;;  %v524_v4 = vadd.f32 %v522_v29, %v353_v17  ;;  %v939_v34 = vpop.permute.xlu1 %938  ;;  %v937_v56 = vpop.permute.xlu0 %936 }
  0xe8   : > { %v830_v44 = vmul.f32 %v4666_v15, %v3548_v13  ;;  %v632_v61 = vsel %vm386_vm10, %v3616_v10, %v3666_v16  ;;  %v735_v6 = vadd.f32 %v725_v32, %v666_v63  ;;  %v736_v41 = vadd.f32 %v732_v27, %v667_v58 }
  0xe9   : > { %2940 = vtanh.f32 %v523_v37  ;;  %v635_v43 = vadd.f32 %v631_v28, %v3664_v49  ;;  %v940_v12 = vsel %vm456_vm8, %v935_v33, %v937_v56  ;;  %v941_v13 = vsel %vm456_vm8, %v937_v56, %v939_v34 }
  0xea   : > { %2942 = vtanh.f32 %v524_v4  ;;  %v739_v50 = vcombine.low %v735_v6, %v736_v41  ;;  %v944_v2 = vadd.f32 %v940_v12, %v829_v48  ;;  %v945_v60 = vadd.f32 %v941_v13, %v830_v44  ;;  %1719 = vrot.lane.b32.xlu1 %v3517_v38, %s4658_s20 }
  0xeb   : > { %v4667_v10 = vstv %s3254_s17  ;;  %v636_v24 = vadd.f32 %v632_v61, %v566_v42  ;;  %v4668_v0 = vcombine.high %v3507_v62, %v3507_v62  ;;  %v1198_v49 = vstv %s3759_s21  ;;  %v1076_v20 = vpop.permute.xlu1 %1075  ;;  %v1074_v17 = vpop.permute.xlu0 %1073  ;;  %s4317_s21 = sld [smem:[#allocation4 + $0x35]]  ;;  %s4340_s17 = sld [smem:[#allocation4 + $0x41]] }
  0xec   : > { %v574_v16 = vmul.f32 %v4667_v10, %v3670_v39  ;;  %v1438_v55 = vstv %s3761_s6  ;;  %v637_v3 = vadd.f32 %v577_v54, %v573_v53  ;;  %v746_v18 = vrot.slane %v739_v50, %v3042_v8  ;;  %s4327_s6 = sld [smem:[#allocation4 + $0x36]] }
  0xed   : > { %1483 = vrot.lane.b32.xlu0 %v4668_v0, %s4658_s20  ;;  %v4669_v32 = vstv %s3333_s12  ;;  %v950_v46 = vcombine.low %v944_v2, %v945_v60  ;;  %v896_v42 = vrot.slane %v3752_v30, %v3042_v8  ;;  %v903_v63 = vrot.slane %v889_v47, %v3042_v8  ;;  %s4130_s12 = sld [smem:[#allocation4 + $0x45]] }
  0xee   : > { %v805_v33 = vmul.f32 %v4669_v32, %v3610_v5  ;;  %v638_v62 = vadd.f32 %v578_v1, %v574_v16  ;;  %v3819_v58 = vsel %vm210_vm6, %v1074_v17, %v1076_v20  ;;  %v706_v29 = vadd.f32 %v637_v3, %v635_v43 }
  0xef   : > { %v747_v53 = vcombine.high %v746_v18, %v746_v18  ;;  %v754_v54 = vrot.slane %v746_v18, %v3042_v8  ;;  %v957_v37 = vrot.slane %v950_v46, %v3042_v8  ;;  %v4670_v5 = vcombine.high %v3517_v38, %v3517_v38  ;;  %v1078_v4 = vpop.permute.xlu0 %1077 }
  0xf0   : > { %v4671_v30 = vstv %s3258_s18  ;;  %v4672_v27 = vstv %s3302_s7  ;;  %v707_v1 = vadd.f32 %v638_v62, %v636_v24  ;;  %v871_v47 = vsel %vm386_vm10, %v3733_v57, %v3731_v59  ;;  %v1086_v57 = vpop.permute.xlu1 %1085  ;;  %s3894_s18 = scalar_lea.vmem %s4614_s2, %s2920_s16  ;;  %s4118_s7 = sld [smem:[#allocation4 + $0x3a]] }
  0xf1   : > { %1723 = vrot.lane.b32.xlu1 %v4670_v5, %s4658_s20  ;;  %v813_v28 = vmul.f32 %v4671_v30, %v3629_v23  ;;  %v597_v14 = vmul.f32 %v4672_v27, %v3728_v11  ;;  %1721 = vrot.lane.b32.xlu0 %v3534_v21, %s4658_s20  ;;  %v4673_v35 = vlaneseq  ;;  %v4674_v38 = vmov 0  ;;  %s4333_s16 = sld [smem:[#allocation4 + $0x38]] }
  0xf2   : > { %v761_v23 = vrot.slane %v747_v53, %v3042_v8  ;;  %v764_v48 = vadd.f32 %v754_v54, %v706_v29  ;;  %v958_v15 = vcombine.high %v957_v37, %v957_v37  ;;  %v965_v44 = vrot.slane %v957_v37, %v3042_v8 }
  0xf3   : > { %vm3841_vm12 = vcmp.lt.s32.totalorder %v4673_v35, 256  ;;  %v4677_v21 = vstv %s3268_s24  ;;  %v4678_v6 = vmov %v4672_v27  ;;  %v906_v34 = vadd.f32 %v896_v42, %v3482_v9  ;;  %v2941_v2 = vpop.eup %2940  ;;  %v1088_v46 = vpop.permute.xlu0 %1087  ;;  %s2911_s24 = sld [smem:[#allocation4 + $0x4d]] }
  0xf4   : > { %v4675_v38 = vsel %vm3841_vm12, 4294967295, %v4674_v38  ;;  %v817_v61 = vmul.f32 %v4677_v21, %v3622_v7  ;;  %v598_v41 = vmul.f32 %v4678_v6, %v3740_v45  ;;  %v3855_v56 = vsel %vm210_vm6, %v1076_v20, %v1078_v4 }
  0xf5   : > { %4676 = vst [vmem:[#allocation14_spill] sm:$0xff] %v4675_v38  ;;  %v765_v43 = vadd.f32 %v761_v23, %v707_v1  ;;  %v766_v12 = vadd.f32 %v764_v48, %v597_v14  ;;  %v907_v13 = vadd.f32 %v903_v63, %v3485_v36  ;;  %v972_v50 = vrot.slane %v958_v15, %v3042_v8  ;;  %v2943_v36 = vpop.eup %2942 }
  0xf6   : > { %2095 = vrot.lane.b32.xlu1 %v3537_v25, %s4658_s20  ;;  %v4679_v7 = vmov %v4671_v30  ;;  %v4680_v10 = vmov %v4677_v21  ;;  %v875_v16 = vadd.f32 %v871_v47, %v805_v33  ;;  %v4681_v24 = vmov %v4669_v32  ;;  %2093 = vrot.lane.b32.xlu0 %v3523_v51, %s4658_s20 }
  0xf7   : > { %v814_v60 = vmul.f32 %v4679_v7, %v3670_v39  ;;  %v818_v9 = vmul.f32 %v4680_v10, %v3636_v52  ;;  %v806_v0 = vmul.f32 %v4681_v24, %v3614_v19  ;;  %v767_v3 = vadd.f32 %v765_v43, %v598_v41  ;;  %v1090_v39 = vpop.permute.xlu1 %1089 }
  0xf8   : > { %v872_v25 = vsel %vm386_vm10, %v3731_v59, %v3765_v40  ;;  %v975_v18 = vadd.f32 %v965_v44, %v906_v34  ;;  %v976_v32 = vadd.f32 %v972_v50, %v907_v13  ;;  %v529_v52 = vcombine.low %v2941_v2, %v2943_v36  ;;  %v4692_v50 = vld [vmem:[#allocation11_spill] sm:$0xff] }
  0xf9   : > { %2944 = vtanh.f32 %v766_v12  ;;  %v1091_v19 = vsel %vm227_vm9, %v1086_v57, %v1088_v46  ;;  %v1092_v33 = vsel %vm227_vm9, %v1088_v46, %v1090_v39  ;;  %v877_v20 = vadd.f32 %v817_v61, %v813_v28 }
  0xfa   : > { %2946 = vtanh.f32 %v767_v3  ;;  %v979_v17 = vcombine.low %v975_v18, %v976_v32  ;;  %v1095_v42 = vsel %vm3344_vm1, %v1091_v19, 0.0  ;;  %2333 = vrot.lane.b32.xlu1 %v3540_v31, %s4658_s20  ;;  %v4682_v59 = vstv %s3304_s8  ;;  %s4120_s8 = sld [smem:[#allocation4 + $0x3c]] }
  0xfb   : > { %v837_v40 = vmul.f32 %v4682_v59, %v3728_v11  ;;  %v536_v63 = vrot.slane %v529_v52, %v3042_v8  ;;  %v878_v62 = vadd.f32 %v818_v9, %v814_v60  ;;  %v4683_v29 = vcombine.high %v3523_v51, %v3523_v51  ;;  %v1100_v28 = vpop.permute.xlu1 %1099  ;;  %v1098_v51 = vpop.permute.xlu0 %1097  ;;  %v4695_v52 = vld [vmem:[#allocation13_spill] sm:$0xff] }
  0xfc   : > { %v1678_v53 = vstv %s3838_s23  ;;  %v946_v54 = vadd.f32 %v877_v20, %v875_v16  ;;  %v876_v37 = vadd.f32 %v872_v25, %v806_v0  ;;  %v986_v11 = vrot.slane %v979_v17, %v3042_v8  ;;  %s4329_s23 = sld [smem:[#allocation4 + $0x3f]] }
  0xfd   : > { %2097 = vrot.lane.b32.xlu0 %v4683_v29, %s4658_s20  ;;  %v4684_v5 = vstv %s3459_s13  ;;  %v537_v27 = vcombine.high %v536_v63, %v536_v63  ;;  %v544_v14 = vrot.slane %v536_v63, %v3042_v8  ;;  %v4685_v1 = vstv %s3475_s26  ;;  %s4237_s13 = sld [smem:[#allocation4 + $0x28]]  ;;  %s4255_s26 = sld [smem:[#allocation4 + $0x31]] }
  0xfe   : > { %v1187_v30 = vmul.f32 %v4684_v5, %v1095_v42  ;;  %v1427_v47 = vmul.f32 %v4685_v1, %v1095_v42  ;;  %v1103_v35 = vsel %vm240_vm7, %v1098_v51, %v1100_v28  ;;  %v987_v23 = vcombine.high %v986_v11, %v986_v11 }
  0xff   : > { %v994_v48 = vrot.slane %v986_v11, %v3042_v8  ;;  %v4686_v15 = vstv %s3477_s27  ;;  %v1107_v4 = vsel %vm3433_vm4, %v1103_v35, 0.0  ;;  %v4688_v21 = vcombine.high %v3540_v31, %v3540_v31  ;;  %558 = vst.msk [vmem:[%s3894_s18] ss:$8 sm:$0x3] %vm3841_vm12, %v544_v14  ;;  %v1142_v10 = vpop.permute.xlu1 %1141  ;;  %v1102_v9 = vpop.permute.xlu0 %1101  ;;  %s4302_s27 = sld [smem:[#allocation4 + $0x24]] }
 0x100   : > { %v1667_v44 = vmul.f32 %v4686_v15, %v1095_v42  ;;  %v551_v61 = vrot.slane %v537_v27, %v3042_v8  ;;  %v4689_v6 = vstv %s3487_s25  ;;  %v4690_v34 = vstv %s3525_s29  ;;  %s4703_s29 = smov 111   ;;  %s4311_s25 = sld [smem:[#allocation4 + $0x2d]] }
 0x101   : > { %2337 = vrot.lane.b32.xlu1 %v4688_v21, %s4658_s20  ;;  %v1191_v41 = vmul.f32 %v4689_v6, %v1107_v4  ;;  %v1431_v43 = vmul.f32 %v4690_v34, %v1107_v4  ;;  %v4691_v12 = vstv %s3527_s3  ;;  %2335 = vrot.lane.b32.xlu0 %v4692_v50, %s4658_s20  ;;  %v947_v2 = vadd.f32 %v878_v62, %v876_v37  ;;  %s4003_s3 = sld [smem:[#allocation4 + $0x1b]] }
 0x102   : > { %v1671_v13 = vmul.f32 %v4691_v12, %v1107_v4  ;;  %v1001_v7 = vrot.slane %v987_v23, %v3042_v8  ;;  %v1004_v31 = vadd.f32 %v994_v48, %v946_v54  ;;  %v1096_v60 = vsel %vm3350_vm2, %v1092_v33, 0.0  ;;  %2828 = vst.msk [vmem:[%s3894_s18 + $0x20] ss:$8 sm:$0x3] %vm3841_vm12, %v551_v61  ;;  %v4700_v54 = vld [vmem:[#allocation12_spill] sm:$0xff]  ;;  %v4704_v48 = vld [vmem:[#allocation7_spill] sm:$0xff] }
 0x103   : > { %v1104_v16 = vsel %vm240_vm7, %v1100_v28, %v1102_v9  ;;  %v3931_v24 = vadd.f32 %v1191_v41, %v1187_v30  ;;  %v3933_v0 = vadd.f32 %v1431_v43, %v1427_v47  ;;  %v4693_v3 = vmov %v4682_v59  ;;  %v2945_v19 = vpop.eup %2944  ;;  %v1146_v28 = vpop.permute.xlu1 %1145 }
 0x104   : > { %v3935_v36 = vadd.f32 %v1671_v13, %v1667_v44  ;;  %v838_v25 = vmul.f32 %v4693_v3, %v3740_v45  ;;  %v1005_v18 = vadd.f32 %v1001_v7, %v947_v2  ;;  %v1006_v32 = vadd.f32 %v1004_v31, %v837_v40  ;;  %v2947_v45 = vpop.eup %2946  ;;  %v1144_v51 = vpop.permute.xlu0 %1143  ;;  %v4706_v31 = vld [vmem:[#allocation8_spill] sm:$0xff] }
 0x105   : > { %v1108_v46 = vsel %vm3439_vm5, %v1104_v16, 0.0  ;;  %2575 = vrot.lane.b32.xlu1 %v4695_v52, %s4658_s20  ;;  %v4696_v33 = vmov %v4684_v5  ;;  %v4697_v17 = vmov %v4685_v1  ;;  %v4698_v59 = vmov %v4689_v6  ;;  %2573 = vrot.lane.b32.xlu0 %v4700_v54, %s4658_s20 }
 0x106   : > { %v1188_v20 = vmul.f32 %v4696_v33, %v1096_v60  ;;  %v1428_v42 = vmul.f32 %v4697_v17, %v1096_v60  ;;  %v1192_v63 = vmul.f32 %v4698_v59, %v1108_v46  ;;  %v4699_v62 = vmov %v4690_v34 }
 0x107   : > { %v1432_v29 = vmul.f32 %v4699_v62, %v1108_v46  ;;  %v1007_v40 = vadd.f32 %v1005_v18, %v838_v25  ;;  %2948 = vtanh.f32 %v1006_v32  ;;  %v4701_v37 = vmov %v4686_v15 }
 0x108   : > { %v1668_v11 = vmul.f32 %v4701_v37, %v1096_v60  ;;  %v4702_v5 = vmov %v4691_v12  ;;  %v772_v27 = vcombine.low %v2945_v19, %v2947_v45  ;;  %v1147_v14 = vsel %vm285_vm0, %v1142_v10, %v1144_v51  ;;  %v4001_v12 = vpop.permute.xlu0 %1153  ;;  %v4707_v10 = vld [vmem:[#allocation6_spill] sm:$0xff] }
 0x109   : > { %v1672_v30 = vmul.f32 %v4702_v5, %v1108_v46  ;;  %v1148_v1 = vsel %vm285_vm0, %v1144_v51, %v1146_v28  ;;  %v3960_v47 = vadd.f32 %v1192_v63, %v1188_v20  ;;  %2950 = vtanh.f32 %v1007_v40  ;;  %2019 = vrot.lane.b32.xlu1 %v4704_v48, %s4703_s29 }
 0x10a   : > { %v1151_v35 = vsel %vm3344_vm1, %v1147_v14, 0.0  ;;  %v1152_v23 = vsel %vm3350_vm2, %v1148_v1, 0.0  ;;  %v3968_v15 = vadd.f32 %v1432_v29, %v1428_v42  ;;  %v779_v44 = vrot.slane %v772_v27, %v3042_v8 }
 0x10b   : > { %v3973_v4 = vmul.f32 %v1198_v49, %v1151_v35  ;;  %v3977_v21 = vmul.f32 %v1198_v49, %v1152_v23  ;;  %v3981_v61 = vmul.f32 %v1438_v55, %v1151_v35  ;;  %v4705_v6 = vcombine.high %v4700_v54, %v4700_v54  ;;  %v3999_v49 = vpop.permute.xlu1 %1155 }
 0x10c   : > { %v3989_v41 = vmul.f32 %v1438_v55, %v1152_v23  ;;  %v3993_v34 = vmul.f32 %v1678_v53, %v1151_v35  ;;  %v3997_v43 = vmul.f32 %v1678_v53, %v1152_v23  ;;  %v4005_v13 = vadd.f32 %v1672_v30, %v1668_v11  ;;  %v1158_v16 = vpop.permute.xlu0 %1157 }
 0x10d   : > { %2577 = vrot.lane.b32.xlu0 %v4705_v6, %s4658_s20  ;;  %v780_v50 = vcombine.high %v779_v44, %v779_v44  ;;  %v787_v55 = vrot.slane %v779_v44, %v3042_v8  ;;  %v1255_v2 = vcombine.low %v3973_v4, %v3977_v21  ;;  %2023 = vrot.lane.b32.xlu1 %v4706_v31, %s4703_s29  ;;  %v4630_v46 = vstv %s4003_s3  ;;  %s4315_s20 = sld [smem:[#allocation4 + $0x2c]] }
 0x10e   : > { %v1495_v53 = vcombine.low %v3981_v61, %v3989_v41  ;;  %v4029_v19 = vsel %vm3433_vm4, %v3819_v58, 0.0  ;;  %v2052_v30 = vstv %s2889_s19  ;;  %v2292_v28 = vstv %s2900_s22  ;;  %s4349_s19 = sld [smem:[#allocation4 + $0x39]]  ;;  %s4357_s22 = sld [smem:[#allocation4 + $0x42]] }
 0x10f   : > { %v794_v60 = vrot.slane %v780_v50, %v3042_v8  ;;  %2838 = vst.msk [vmem:[%s3894_s18 + $0x1] ss:$8 sm:$0x3] %vm3841_vm12, %v787_v55  ;;  %v1166_v9 = vpop.permute.xlu1 %1165  ;;  %v1179_v59 = vmul.f32 %v4630_v46, %v4029_v19  ;;  %v2532_v27 = vstv %s2911_s24  ;;  %s4359_s24 = sld [smem:[#allocation4 + $0x4b]] }
 0x110   : > { %v1168_v32 = vpop.permute.xlu0 %1167 }
 0x111   : > { %2021 = vrot.lane.b32.xlu0 %v4707_v10, %s4703_s29  ;;  %2839 = vst.msk [vmem:[%s3894_s18 + $0x21] ss:$8 sm:$0x3] %vm3841_vm12, %v794_v60  ;;  %v2949_v3 = vpop.eup %2948  ;;  %v4032_v33 = vsel %vm311_vm11, %v1166_v9, %v1168_v32  ;;  %s4347_s29 = sld [smem:[#allocation4 + $0x4a]] }
 0x112   : > { %v4178_v7 = vsel %vm3344_vm1, %v4032_v33, 0.0 }
 0x113   : > { %v2951_v25 = vpop.eup %2950  ;;  %v1170_v18 = vpop.permute.xlu1 %1169 }
 0x114   : > { %v1012_v52 = vcombine.low %v2949_v3, %v2951_v25  ;;  %v4035_v20 = vsel %vm311_vm11, %v1168_v32, %v1170_v18  ;;  %v1240_v63 = vpop.permute.xlu0 %1239  ;;  %v1159_v18 = vsel %vm298_vm3, %v4001_v12, %v3999_v49  ;;  %v1160_v32 = vsel %vm298_vm3, %v3999_v49, %v1158_v16 }
 0x115   : > { %v1262_v12 = vrot.slane %v1255_v2, %v3042_v8 }
 0x116   : > { %v1019_v17 = vrot.slane %v1012_v52, %v3042_v8 }
 0x117   : > { %v4038_v42 = vpop.permute.xlu1 %1241 }
 0x118   : > { %v1020_v58 = vcombine.high %v1019_v17, %v1019_v17  ;;  %v1027_v62 = vrot.slane %v1019_v17, %v3042_v8  ;;  %v1245_v29 = vsel %vm386_vm10, %v1240_v63, %v4038_v42  ;;  %v1996_v11 = vpop.permute.xlu0 %1995  ;;  %v4089_v63 = vsel %vm3433_vm4, %v1159_v18, 0.0 }
 0x119   : > { %v1249_v54 = vadd.f32 %v1245_v29, %v1179_v59 }
 0x11a   : > { %v1034_v45 = vrot.slane %v1020_v58, %v3042_v8  ;;  %2849 = vst.msk [vmem:[%s3894_s18 + $0x2] ss:$8 sm:$0x3] %vm3841_vm12, %v1027_v62  ;;  %v4093_v58 = vsel %vm3439_vm5, %v1160_v32, 0.0  ;;  %v1202_v62 = vstv %s2857_s28  ;;  %s4366_s28 = sld [smem:[#allocation4 + $0x3e]] }
 0x11b   : > { %v4051_v40 = vadd.f32 %v3931_v24, %v1249_v54  ;;  %v1998_v37 = vpop.permute.xlu1 %1997  ;;  %v1203_v16 = vmul.f32 %v1202_v62, %v4089_v63  ;;  %v1204_v54 = vmul.f32 %v1202_v62, %v4093_v58 }
 0x11c   : > { %2850 = vst.msk [vmem:[%s3894_s18 + $0x22] ss:$8 sm:$0x3] %vm3841_vm12, %v1034_v45  ;;  %v2001_v5 = vsel %vm285_vm0, %v1996_v11, %v1998_v37  ;;  %v2000_v1 = vpop.permute.xlu0 %1999  ;;  %v1263_v11 = vcombine.high %v1262_v12, %v1262_v12 }
 0x11d   : > { %v2005_v51 = vsel %vm3344_vm1, %v2001_v5, 0.0  ;;  %v2002_v35 = vsel %vm285_vm0, %v1998_v37, %v2000_v1  ;;  %v1270_v1 = vrot.slane %v1262_v12, %v3042_v8 }
 0x11e   : > { %v4060_v24 = vmul.f32 %v2052_v30, %v2005_v51  ;;  %v4062_v23 = vmul.f32 %v2292_v28, %v2005_v51  ;;  %v2006_v48 = vsel %vm3350_vm2, %v2002_v35, 0.0  ;;  %v4066_v44 = vmul.f32 %v2532_v27, %v2005_v51 }
 0x11f   : > { %v2008_v14 = vpop.permute.xlu1 %2007  ;;  %v4068_v6 = vmul.f32 %v2052_v30, %v2006_v48  ;;  %v4070_v50 = vmul.f32 %v2292_v28, %v2006_v48  ;;  %v4072_v55 = vmul.f32 %v2532_v27, %v2006_v48  ;;  %v4105_v30 = vld [vmem:[#allocation2 + $0x5] ss:$4 sm:$0x3]  ;;  %v1194_v28 = vstv %s2855_s30  ;;  %v4107_v27 = vld [vmem:[#allocation2 + $0x15] ss:$4 sm:$0x3] }
 0x120   : > { %v2010_v60 = vpop.permute.xlu0 %2009  ;;  %v1277_v35 = vrot.slane %v1263_v11, %v3042_v8  ;;  %v2048_v11 = vstv %s4118_s7  ;;  %s4384_s30 = sld [smem:[#allocation4 + $0x50]] }
 0x121   : > { %v2109_v10 = vcombine.low %v4060_v24, %v4068_v6  ;;  %v2013_v25 = vsel %vm298_vm3, %v2008_v14, %v2010_v60  ;;  %v1195_v14 = vmul.f32 %v1194_v28, %v4105_v30  ;;  %v1196_v24 = vmul.f32 %v1194_v28, %v4107_v27 }
 0x123   : > { %v2012_v31 = vpop.permute.xlu1 %2011  ;;  %v1280_v32 = vadd.f32 %v1270_v1, %v1195_v14  ;;  %v2116_v28 = vrot.slane %v2109_v10, %v3042_v8  ;;  %v2288_v14 = vstv %s4128_s11  ;;  %v1210_v1 = vstv %s4124_s10 }
 0x124   : > { %v2014_v52 = vsel %vm298_vm3, %v2010_v60, %v2012_v31  ;;  %v1309_v59 = vpop.permute.xlu0 %1308 }
 0x125   : > { %v2124_v33 = vrot.slane %v2116_v28, %v3042_v8 }
 0x127   : > { %v1311_v17 = vpop.permute.xlu1 %1310 }
 0x128   : > { %v1314_v49 = vsel %vm456_vm8, %v1309_v59, %v1311_v17  ;;  %v1313_v45 = vpop.permute.xlu0 %1312 }
 0x129   : > { %v1315_v37 = vsel %vm456_vm8, %v1311_v17, %v1313_v45  ;;  %v1318_v5 = vadd.f32 %v1314_v49, %v1203_v16  ;;  %v1281_v17 = vadd.f32 %v1277_v35, %v1196_v24  ;;  %v4148_v45 = vsel %vm3439_vm5, %v2014_v52, 0.0 }
 0x12a   : > { %v1319_v51 = vadd.f32 %v1315_v37, %v1204_v54  ;;  %v4144_v54 = vsel %vm3433_vm4, %v2013_v25, 0.0  ;;  %v4150_v37 = vld [vmem:[#allocation2 + $0x6] ss:$4 sm:$0x3]  ;;  %v1682_v35 = vstv %s4115_s5  ;;  %v2296_v24 = vstv %s4130_s12 }
 0x12b   : > { %v4101_v29 = vpop.permute.xlu1 %1548  ;;  %v2049_v52 = vmul.f32 %v2048_v11, %v4150_v37  ;;  %v1684_v46 = vmul.f32 %v1682_v35, %v4093_v58 }
 0x12c   : > { %v1324_v4 = vcombine.low %v1318_v5, %v1319_v51  ;;  %v4113_v2 = vpop.permute.xlu0 %1550  ;;  %v2056_v5 = vstv %s4120_s8 }
 0x12e   : > { %v1331_v48 = vrot.slane %v1324_v4, %v3042_v8  ;;  %v1442_v4 = vstv %s4111_s4 }
 0x12f   : > { %v4109_v21 = vpop.permute.xlu1 %1552 }
 0x130   : > { %v1332_v6 = vcombine.high %v1331_v48, %v1331_v48  ;;  %v1339_v31 = vrot.slane %v1331_v48, %v3042_v8  ;;  %v4137_v18 = vpop.permute.xlu0 %1788  ;;  %v2117_v48 = vcombine.high %v2116_v28, %v2116_v28 }
 0x132   : > { %v1346_v59 = vrot.slane %v1332_v6, %v3042_v8  ;;  %v1349_v62 = vadd.f32 %v1339_v31, %v1280_v32  ;;  %v4161_v6 = vld [vmem:[#allocation2 + $0x16] ss:$4 sm:$0x3]  ;;  %v2057_v31 = vmul.f32 %v2056_v5, %v4144_v54  ;;  %v2058_v32 = vmul.f32 %v2056_v5, %v4148_v45 }
 0x133   : > { %v4135_v60 = vpop.permute.xlu1 %1790  ;;  %v2050_v9 = vmul.f32 %v2048_v11, %v4161_v6  ;;  %v1211_v11 = vmul.f32 %v1210_v1, %v4178_v7  ;;  %v2131_v41 = vrot.slane %v2117_v48, %v3042_v8  ;;  %v2134_v48 = vadd.f32 %v2124_v33, %v2049_v52 }
 0x134   : > { %v1350_v12 = vadd.f32 %v1346_v59, %v1281_v17  ;;  %v1793_v16 = vpop.permute.xlu0 %1792  ;;  %v1683_v33 = vmul.f32 %v1682_v35, %v4089_v63 }
 0x136   : > { %v1353_v51 = vcombine.low %v1349_v62, %v1350_v12  ;;  %v4172_v12 = vmul.f32 %v2288_v14, %v4150_v37 }
 0x137   : > { %v2163_v49 = vpop.permute.xlu1 %2162 }
 0x138   : > { %v2165_v17 = vpop.permute.xlu0 %2164  ;;  %v4167_v10 = vrot.slane %v1353_v51, %v3042_v8  ;;  %v1443_v51 = vmul.f32 %v1442_v4, %v4089_v63  ;;  %v4710_v63 = vstv %s4132_s0 }
 0x139   : > { %v2168_v59 = vsel %vm456_vm8, %v2163_v49, %v2165_v17  ;;  %v4183_v49 = vmul.f32 %v2288_v14, %v4161_v6  ;;  %v4708_v14 = vcombine.low %v4062_v23, %v4070_v50  ;;  %v4709_v23 = vcombine.low %v4066_v44, %v4072_v55 }
 0x13a   : > { %v2172_v5 = vadd.f32 %v2168_v59, %v2057_v31  ;;  %v1444_v31 = vmul.f32 %v1442_v4, %v4093_v58  ;;  %v2298_v58 = vmul.f32 %v2296_v24, %v4148_v45  ;;  %v1795_v44 = vsel %vm456_vm8, %v4135_v60, %v1793_v16 }
 0x13b   : > { %v2167_v25 = vpop.permute.xlu1 %2166  ;;  %v4216_v50 = vrot.slane %v4709_v23, %v3042_v8  ;;  %v2135_v23 = vadd.f32 %v2131_v41, %v2050_v9  ;;  %v2537_v35 = vmul.f32 %v4710_v63, %v4144_v54 }
 0x13c   : > { %v2169_v62 = vsel %vm456_vm8, %v2165_v17, %v2167_v25  ;;  %v1368_v25 = vrot.slane %v4167_v10, %v3042_v8  ;;  %v4191_v17 = vrot.slane %v1495_v53, %v3042_v8  ;;  %v2403_v38 = vpop.permute.xlu0 %2402  ;;  %v1554_v53 = vsel %vm456_vm8, %v4101_v29, %v4113_v2 }
 0x13d   : > { %v2173_v3 = vadd.f32 %v2169_v62, %v2058_v32  ;;  %v2356_v62 = vrot.slane %v4708_v14, %v3042_v8  ;;  %v2597_v9 = vcombine.high %v4216_v50, %v4216_v50 }
 0x13e   : > { %v1378_v61 = vadd.f32 %v1368_v25, %v4051_v40  ;;  %v2297_v40 = vmul.f32 %v2296_v24, %v4144_v54  ;;  %v2604_v54 = vrot.slane %v4216_v50, %v3042_v8  ;;  %v1503_v50 = vcombine.high %v4191_v17, %v4191_v17 }
 0x13f   : > { %v2178_v32 = vcombine.low %v2172_v5, %v2173_v3  ;;  %v2405_v59 = vpop.permute.xlu1 %2404  ;;  %v1555_v3 = vsel %vm456_vm8, %v4113_v2, %v4109_v21  ;;  %v2357_v25 = vcombine.high %v2356_v62, %v2356_v62  ;;  %v2364_v16 = vrot.slane %v2356_v62, %v3042_v8 }
 0x140   : > { %v4220_v4 = vadd.f32 %v1378_v61, %v1211_v11  ;;  %v2408_v21 = vsel %vm456_vm8, %v2403_v38, %v2405_v59  ;;  %v1559_v14 = vadd.f32 %v1555_v3, %v1444_v31  ;;  %v2407_v55 = vpop.permute.xlu0 %2406  ;;  %v1794_v38 = vsel %vm456_vm8, %v4137_v18, %v4135_v60 }
 0x141   : > { %v2185_v28 = vrot.slane %v2178_v32, %v3042_v8  ;;  %v1558_v32 = vadd.f32 %v1554_v53, %v1443_v51  ;;  %v2409_v52 = vsel %vm456_vm8, %v2405_v59, %v2407_v55  ;;  %v2412_v51 = vadd.f32 %v2408_v21, %v2297_v40 }
 0x142   : > { %v2413_v31 = vadd.f32 %v2409_v52, %v2298_v58  ;;  %v1799_v61 = vadd.f32 %v1795_v44, %v1684_v46  ;;  %v4711_v60 = vmov %v4710_v63  ;;  %v2371_v62 = vrot.slane %v2357_v25, %v3042_v8 }
 0x143   : > { %v2186_v29 = vcombine.high %v2185_v28, %v2185_v28  ;;  %v2193_v5 = vrot.slane %v2185_v28, %v3042_v8  ;;  %v2643_v2 = vpop.permute.xlu1 %2642  ;;  %v1564_v59 = vcombine.low %v1558_v32, %v1559_v14  ;;  %v2538_v18 = vmul.f32 %v4711_v60, %v4148_v45 }
 0x144   : > { %v2418_v3 = vcombine.low %v2412_v51, %v2413_v31  ;;  %v2645_v28 = vpop.permute.xlu0 %2644  ;;  %v1798_v40 = vadd.f32 %v1794_v38, %v1683_v33  ;;  %v2374_v25 = vadd.f32 %v2364_v16, %v4172_v12  ;;  %v4713_v12 = vcombine.low %v3993_v34, %v3997_v43 }
 0x145   : > { %v2200_v24 = vrot.slane %v2186_v29, %v3042_v8  ;;  %v4227_v11 = vadd.f32 %v2193_v5, %v2134_v48  ;;  %v2648_v58 = vsel %vm456_vm8, %v2643_v2, %v2645_v28  ;;  %v4712_v2 = vstv %s4139_s9 }
 0x146   : > { %v2425_v48 = vrot.slane %v2418_v3, %v3042_v8  ;;  %v2652_v29 = vadd.f32 %v2648_v58, %v2537_v35  ;;  %v1804_v45 = vcombine.low %v1798_v40, %v1799_v61  ;;  %v2529_v32 = vmul.f32 %v4712_v2, %v4150_v37 }
 0x147   : > { %v4239_v41 = vadd.f32 %v2200_v24, %v2135_v23  ;;  %v2647_v53 = vpop.permute.xlu1 %2646  ;;  %v4264_v44 = vrot.slane %v1564_v59, %v3042_v8  ;;  %v1742_v33 = vrot.slane %v4713_v12, %v3042_v8  ;;  %v2611_v37 = vrot.slane %v2597_v9, %v3042_v8 }
 0x148   : > { %v2649_v46 = vsel %vm456_vm8, %v2645_v28, %v2647_v53  ;;  %v2426_v55 = vcombine.high %v2425_v48, %v2425_v48  ;;  %v2433_v23 = vrot.slane %v2425_v48, %v3042_v8  ;;  %v4267_v52 = vpop.permute.xlu0 %1927  ;;  %v4714_v38 = vmov %v4712_v2 }
 0x149   : > { %v2653_v5 = vadd.f32 %v2649_v46, %v2538_v18  ;;  %v2207_v21 = vcombine.low %v4227_v11, %v4239_v41  ;;  %v2530_v51 = vmul.f32 %v4714_v38, %v4161_v6  ;;  %v2375_v31 = vadd.f32 %v2371_v62, %v4183_v49 }
 0x14a   : > { %v2440_v16 = vrot.slane %v2426_v55, %v3042_v8  ;;  %v4281_v61 = vadd.f32 %v2433_v23, %v2374_v25  ;;  %v1434_v59 = vstv %s4237_s13  ;;  %v4286_v3 = vrot.slane %v1804_v45, %v3042_v8 }
 0x14b   : > { %v4261_v14 = vpop.permute.xlu1 %1929  ;;  %v2658_v24 = vcombine.low %v2652_v29, %v2653_v5  ;;  %v2614_v34 = vadd.f32 %v2604_v54, %v2529_v32  ;;  %v1572_v9 = vcombine.high %v4264_v44, %v4264_v44  ;;  %v1517_v60 = vrot.slane %v1503_v50, %v3042_v8 }
 0x14c   : > { %v4292_v6 = vadd.f32 %v2440_v16, %v2375_v31  ;;  %v4295_v35 = vpop.permute.xlu0 %1931  ;;  %v1743_v18 = vcombine.high %v1742_v33, %v1742_v33  ;;  %v1436_v28 = vmul.f32 %v1434_v59, %v4107_v27  ;;  %v2615_v62 = vadd.f32 %v2611_v37, %v2530_v51 }
 0x14d   : > { %v2665_v53 = vrot.slane %v2658_v24, %v3042_v8  ;;  %v1674_v48 = vstv %s4255_s26  ;;  %v1812_v29 = vcombine.high %v4286_v3, %v4286_v3  ;;  %v1510_v54 = vrot.slane %v4191_v17, %v3042_v8 }
 0x14e   : > { %v2447_v46 = vcombine.low %v4281_v61, %v4292_v6  ;;  %v1435_v45 = vmul.f32 %v1434_v59, %v4105_v30  ;;  %v1586_v25 = vrot.slane %v1572_v9, %v3042_v8  ;;  %v1757_v55 = vrot.slane %v1743_v18, %v3042_v8 }
 0x14f   : > { %v4288_v43 = vpop.permute.xlu1 %1939  ;;  %v2666_v49 = vcombine.high %v2665_v53, %v2665_v53  ;;  %v2673_v63 = vrot.slane %v2665_v53, %v3042_v8  ;;  %v1676_v23 = vmul.f32 %v1674_v48, %v4107_v27  ;;  %v1521_v17 = vadd.f32 %v1517_v60, %v1436_v28 }
 0x150   : > { %v4323_v32 = vpop.permute.xlu0 %1941  ;;  %v1579_v24 = vrot.slane %v4264_v44, %v3042_v8  ;;  %v1750_v50 = vrot.slane %v1742_v33, %v3042_v8  ;;  %v1675_v12 = vmul.f32 %v1674_v48, %v4105_v30  ;;  %v1826_v37 = vrot.slane %v1812_v29, %v3042_v8 }
 0x151   : > { %v2680_v40 = vrot.slane %v2666_v49, %v3042_v8  ;;  %v4300_v58 = vadd.f32 %v2673_v63, %v2614_v34  ;;  %v1084_v38 = vsel %vm3439_vm5, %v3855_v56, 0.0  ;;  %v1520_v44 = vadd.f32 %v1510_v54, %v1435_v45 }
 0x152   : > { %v1590_v51 = vadd.f32 %v1586_v25, %v1521_v17  ;;  %v1761_v31 = vadd.f32 %v1757_v55, %v1676_v23  ;;  %v1819_v16 = vrot.slane %v4286_v3, %v3042_v8  ;;  %v1418_v53 = vstv %s4302_s27 }
 0x153   : > { %v4309_v5 = vpop.permute.xlu1 %1943  ;;  %v4321_v2 = vadd.f32 %v2680_v40, %v2615_v62  ;;  %v1589_v56 = vadd.f32 %v1579_v24, %v1520_v44  ;;  %v1760_v59 = vadd.f32 %v1750_v50, %v1675_v12  ;;  %v4715_v49 = vstv %s4003_s3  ;;  %s4376_s3 = sld [smem:[#allocation4 + $0x47]] }
 0x154   : > { %v4351_v30 = vpop.permute.xlu0 %1951  ;;  %v1830_v34 = vadd.f32 %v1826_v37, %v1761_v31  ;;  %v1180_v63 = vmul.f32 %v4715_v49, %v1084_v38  ;;  %v1361_v60 = vcombine.high %v4167_v10, %v4167_v10  ;;  %v1450_v3 = vstv %s4315_s20 }
 0x155   : > { %v2687_v33 = vcombine.low %v4300_v58, %v4321_v2  ;;  %v1593_v62 = vcombine.low %v1589_v56, %v1590_v51  ;;  %v1658_v40 = vstv %s4311_s25  ;;  %v1690_v48 = vstv %s4317_s21 }
 0x156   : > { %v1829_v29 = vadd.f32 %v1819_v16, %v1760_v59  ;;  %v2032_v45 = vstv %s4327_s6  ;;  %v1176_v10 = vsel %vm3350_vm2, %v4035_v20, 0.0  ;;  %v2040_v25 = vstv %s4333_s16 }
 0x157   : > { %v4342_v27 = vpop.permute.xlu1 %1953  ;;  %v2512_v55 = vstv %s4335_s15  ;;  %v2280_v23 = vstv %s4340_s17  ;;  %v1375_v24 = vrot.slane %v1361_v60, %v3042_v8  ;;  %v2520_v37 = vstv %s4347_s29 }
 0x158   : > { %v4371_v28 = vpop.permute.xlu0 %1955  ;;  %v1833_v12 = vcombine.low %v1829_v29, %v1830_v34  ;;  %v2044_v44 = vstv %s4349_s19  ;;  %v1419_v51 = vmul.f32 %v1418_v53, %v4029_v19  ;;  %v1600_v20 = vrot.slane %v1593_v62, %v3042_v8 }
 0x159   : > { %v1212_v16 = vmul.f32 %v1210_v1, %v1176_v10  ;;  %v2284_v56 = vstv %s4357_s22  ;;  %v2524_v49 = vstv %s4359_s24  ;;  %v1659_v34 = vmul.f32 %v1658_v40, %v4029_v19 }
 0x15a   : > { %v1660_v29 = vmul.f32 %v1658_v40, %v1084_v38  ;;  %v2064_v62 = vstv %s4366_s28  ;;  %2952 = vtanh.f32 %v4220_v4  ;;  %v1608_v1 = vrot.slane %v1600_v20, %v3042_v8 }
 0x15b   : > { %v1244_v9 = vpop.permute.xlu1 %1243  ;;  %v1452_v4 = vmul.f32 %v1450_v3, %v1176_v10  ;;  %v1934_v11 = vsel %vm210_vm6, %v4261_v14, %v4295_v35 }
 0x15c   : > { %v1246_v18 = vsel %vm386_vm10, %v4038_v42, %v1244_v9  ;;  %v2272_v42 = vstv %s4329_s23  ;;  %v1480_v31 = vpop.permute.xlu0 %1479 }
 0x15d   : > { %v1250_v54 = vadd.f32 %v1246_v18, %v1180_v63  ;;  %v1420_v63 = vmul.f32 %v1418_v53, %v1084_v38  ;;  %v1933_v53 = vsel %vm210_vm6, %v4267_v52, %v4261_v14  ;;  %v1451_v38 = vmul.f32 %v1450_v3, %v4178_v7 }
 0x15e   : > { %v1937_v52 = vsel %vm3433_vm4, %v1933_v53, 0.0 }
 0x15f   : > { %v1321_v17 = vadd.f32 %v3960_v47, %v1250_v54  ;;  %v1482_v50 = vpop.permute.xlu1 %1481  ;;  %v1840_v54 = vrot.slane %v1833_v12, %v3042_v8 }
 0x160   : > { %v1485_v9 = vsel %vm386_vm10, %v1480_v31, %v1482_v50  ;;  %v1484_v31 = vpop.permute.xlu0 %1483 }
 0x161   : > { %v1379_v59 = vadd.f32 %v1375_v24, %v1321_v17  ;;  %v1489_v47 = vadd.f32 %v1485_v9, %v1419_v51  ;;  %v1601_v24 = vcombine.high %v1600_v20, %v1600_v20  ;;  %v1486_v19 = vsel %vm386_vm10, %v1482_v50, %v1484_v31 }
 0x162   : > { %v2304_v51 = vstv %s4376_s3  ;;  %v1490_v12 = vadd.f32 %v1486_v19, %v1420_v63  ;;  %v4416_v20 = vrot.slane %v2207_v21, %v3042_v8  ;;  %v2273_v19 = vmul.f32 %v2272_v42, %v1937_v52 }
 0x163   : > { %v1381_v60 = vadd.f32 %v1379_v59, %v1212_v16  ;;  %v1720_v18 = vpop.permute.xlu1 %1719  ;;  %v1560_v17 = vadd.f32 %v3933_v0, %v1489_v47  ;;  %v2544_v16 = vstv %s4384_s30  ;;  %v1691_v59 = vmul.f32 %v1690_v48, %v4178_v7 }
 0x164   : > { %v1841_v0 = vcombine.high %v1840_v54, %v1840_v54  ;;  %v1615_v47 = vrot.slane %v1601_v24, %v3042_v8  ;;  %v1561_v63 = vadd.f32 %v3968_v15, %v1490_v12  ;;  %v1722_v3 = vpop.permute.xlu0 %1721  ;;  %v1848_v7 = vrot.slane %v1840_v54, %v3042_v8 }
 0x165   : > { %2954 = vtanh.f32 %v1381_v60  ;;  %v1618_v40 = vadd.f32 %v1608_v1, %v1560_v17  ;;  %v1692_v60 = vmul.f32 %v1690_v48, %v1176_v10  ;;  %v1725_v1 = vsel %vm386_vm10, %v1720_v18, %v1722_v3 }
 0x166   : > { %v1619_v41 = vadd.f32 %v1615_v47, %v1561_v63  ;;  %v1729_v21 = vadd.f32 %v1725_v1, %v1659_v34  ;;  %v1855_v24 = vrot.slane %v1841_v0, %v3042_v8  ;;  %v2033_v15 = vmul.f32 %v2032_v45, %v1937_v52 }
 0x167   : > { %v1724_v9 = vpop.permute.xlu1 %1723  ;;  %v1620_v50 = vadd.f32 %v1618_v40, %v1451_v38  ;;  %v2222_v48 = vrot.slane %v4416_v20, %v3042_v8  ;;  %v2215_v10 = vcombine.high %v4416_v20, %v4416_v20  ;;  %v1945_v18 = vsel %vm227_vm9, %v4288_v43, %v4323_v32  ;;  %v2953_v43 = vpop.eup %2952 }
 0x168   : > { %v1726_v17 = vsel %vm386_vm10, %v1722_v3, %v1724_v9  ;;  %v1621_v14 = vadd.f32 %v1619_v41, %v1452_v4  ;;  %v1800_v35 = vadd.f32 %v3935_v36, %v1729_v21  ;;  %v1938_v54 = vsel %vm3439_vm5, %v1934_v11, 0.0 }
 0x169   : > { %v1730_v31 = vadd.f32 %v1726_v17, %v1660_v29  ;;  %v2094_v29 = vpop.permute.xlu0 %2093  ;;  %2956 = vtanh.f32 %v1620_v50  ;;  %v4448_v38 = vrot.slane %v2447_v46, %v3042_v8  ;;  %v1957_v36 = vsel %vm240_vm7, %v4351_v30, %v4342_v27 }
 0x16a   : > { %2958 = vtanh.f32 %v1621_v14  ;;  %v1946_v4 = vsel %vm227_vm9, %v4323_v32, %v4309_v5  ;;  %v1949_v61 = vsel %vm3344_vm1, %v1945_v18, 0.0  ;;  %v4459_v46 = vrot.slane %v2215_v10, %v3042_v8 }
 0x16b   : > { %v2096_v53 = vpop.permute.xlu1 %2095  ;;  %v1801_v34 = vadd.f32 %v4005_v13, %v1730_v31  ;;  %v1858_v13 = vadd.f32 %v1848_v7, %v1800_v35  ;;  %v4463_v30 = vmul.f32 %v2512_v55, %v1937_v52  ;;  %v1958_v0 = vsel %vm240_vm7, %v4342_v27, %v4371_v28 }
 0x16c   : > { %v1961_v32 = vsel %vm3433_vm4, %v1957_v36, 0.0  ;;  %v2034_v63 = vmul.f32 %v2032_v45, %v1938_v54  ;;  %v2274_v3 = vmul.f32 %v2272_v42, %v1938_v54  ;;  %v4476_v52 = vmul.f32 %v2512_v55, %v1938_v54 }
 0x16d   : > { %v1859_v40 = vadd.f32 %v1855_v24, %v1801_v34  ;;  %v1860_v50 = vadd.f32 %v1858_v13, %v1691_v59  ;;  %v1950_v7 = vsel %vm3350_vm2, %v1946_v4, 0.0  ;;  %v2455_v28 = vcombine.high %v4448_v38, %v4448_v38 }
 0x16e   : > { %v2041_v57 = vmul.f32 %v2040_v25, %v1949_v61  ;;  %v1962_v45 = vsel %vm3439_vm5, %v1958_v0, 0.0  ;;  %v2462_v55 = vrot.slane %v4448_v38, %v3042_v8  ;;  %v2045_v59 = vmul.f32 %v2044_v44, %v1961_v32 }
 0x16f   : > { %v2955_v12 = vpop.eup %2954  ;;  %v2334_v6 = vpop.permute.xlu1 %2333  ;;  %v1861_v47 = vadd.f32 %v1859_v40, %v1692_v60  ;;  %2960 = vtanh.f32 %v1860_v50  ;;  %v2099_v17 = vsel %vm386_vm10, %v2094_v29, %v2096_v53  ;;  %v2285_v39 = vmul.f32 %v2284_v56, %v1961_v32 }
 0x170   : > { %v1386_v9 = vcombine.low %v2953_v43, %v2955_v12  ;;  %v2098_v5 = vpop.permute.xlu0 %2097  ;;  %v2042_v24 = vmul.f32 %v2040_v25, %v1950_v7  ;;  %v2046_v14 = vmul.f32 %v2044_v44, %v1962_v45  ;;  %v2286_v35 = vmul.f32 %v2284_v56, %v1962_v45 }
 0x171   : > { %2962 = vtanh.f32 %v1861_v47  ;;  %v2100_v41 = vsel %vm386_vm10, %v2096_v53, %v2098_v5  ;;  %v2281_v53 = vmul.f32 %v2280_v23, %v1949_v61  ;;  %v2282_v29 = vmul.f32 %v2280_v23, %v1950_v7 }
 0x172   : > { %v1393_v27 = vrot.slane %v1386_v9, %v3042_v8  ;;  %v2103_v54 = vadd.f32 %v2099_v17, %v2033_v15  ;;  %v4516_v25 = vrot.slane %v2687_v33, %v3042_v8  ;;  %v2521_v44 = vmul.f32 %v2520_v37, %v1949_v61 }
 0x173   : > { %v2338_v42 = vpop.permute.xlu1 %2337  ;;  %v2957_v34 = vpop.eup %2956  ;;  %v2104_v56 = vadd.f32 %v2100_v41, %v2034_v63  ;;  %v2522_v23 = vmul.f32 %v2520_v37, %v1950_v7  ;;  %v2105_v4 = vadd.f32 %v2045_v59, %v2041_v57  ;;  %v2526_v58 = vmul.f32 %v2524_v49, %v1962_v45 }
 0x174   : > { %v1394_v60 = vcombine.high %v1393_v27, %v1393_v27  ;;  %v1401_v1 = vrot.slane %v1393_v27, %v3042_v8  ;;  %v2336_v11 = vpop.permute.xlu0 %2335  ;;  %v2959_v36 = vpop.eup %2958  ;;  %v2106_v2 = vadd.f32 %v2046_v14, %v2042_v24  ;;  %v2346_v33 = vadd.f32 %v2286_v35, %v2282_v29 }
 0x175   : > { %v2339_v21 = vsel %vm386_vm10, %v2334_v6, %v2336_v11  ;;  %v2340_v31 = vsel %vm386_vm10, %v2336_v11, %v2338_v42  ;;  %v1626_v15 = vcombine.low %v2957_v34, %v2959_v36  ;;  %v2345_v6 = vadd.f32 %v2285_v39, %v2281_v53 }
 0x176   : > { %v1408_v10 = vrot.slane %v1394_v60, %v3042_v8  ;;  %2860 = vst.msk [vmem:[%s3894_s18 + $0x3] ss:$8 sm:$0x3] %vm3841_vm12, %v1401_v1  ;;  %v2343_v13 = vadd.f32 %v2339_v21, %v2273_v19  ;;  %v2344_v40 = vadd.f32 %v2340_v31, %v2274_v3  ;;  %v2525_v61 = vmul.f32 %v2524_v49, %v1961_v32 }
 0x177   : > { %v2576_v43 = vpop.permute.xlu1 %2575  ;;  %v1633_v0 = vrot.slane %v1626_v15, %v3042_v8  ;;  %v2174_v50 = vadd.f32 %v2105_v4, %v2103_v54  ;;  %v2695_v19 = vcombine.high %v4516_v25, %v4516_v25  ;;  %v2175_v37 = vadd.f32 %v2106_v2, %v2104_v56 }
 0x178   : > { %2861 = vst.msk [vmem:[%s3894_s18 + $0x23] ss:$8 sm:$0x3] %vm3841_vm12, %v1408_v10  ;;  %v2574_v12 = vpop.permute.xlu0 %2573  ;;  %v2469_v63 = vrot.slane %v2455_v28, %v3042_v8  ;;  %v2414_v3 = vadd.f32 %v2345_v6, %v2343_v13  ;;  %v2415_v7 = vadd.f32 %v2346_v33, %v2344_v40  ;;  %v2702_v60 = vrot.slane %v4516_v25, %v3042_v8 }
 0x179   : > { %v2579_v9 = vsel %vm386_vm10, %v2574_v12, %v2576_v43  ;;  %v2961_v5 = vpop.eup %2960  ;;  %v1634_v45 = vcombine.high %v1633_v0, %v1633_v0  ;;  %v1641_v42 = vrot.slane %v1633_v0, %v3042_v8  ;;  %v2586_v1 = vadd.f32 %v2526_v58, %v2522_v23 }
 0x17a   : > { %v2583_v49 = vadd.f32 %v2579_v9, %v4463_v30  ;;  %v2232_v11 = vadd.f32 %v2222_v48, %v2174_v50  ;;  %v2585_v30 = vadd.f32 %v2525_v61, %v2521_v44  ;;  %v2709_v39 = vrot.slane %v2695_v19, %v3042_v8 }
 0x17b   : > { %v2020_v47 = vpop.permute.xlu1 %2019  ;;  %v2963_v57 = vpop.eup %2962  ;;  %v1648_v28 = vrot.slane %v1634_v45, %v3042_v8  ;;  %2871 = vst.msk [vmem:[%s3894_s18 + $0x4] ss:$8 sm:$0x3] %vm3841_vm12, %v1641_v42  ;;  %v2233_v31 = vadd.f32 %v4459_v46, %v2175_v37  ;;  %v2473_v20 = vadd.f32 %v2469_v63, %v2415_v7 }
 0x17c   : > { %v1866_v59 = vcombine.low %v2961_v5, %v2963_v57  ;;  %v2654_v48 = vadd.f32 %v2585_v30, %v2583_v49 }
 0x17d   : > { %2872 = vst.msk [vmem:[%s3894_s18 + $0x24] ss:$8 sm:$0x3] %vm3841_vm12, %v1648_v28 }
 0x17e   : > { %v1873_v21 = vrot.slane %v1866_v59, %v3042_v8  ;;  %v2712_v56 = vadd.f32 %v2702_v60, %v2654_v48 }
 0x17f   : > { %v2578_v27 = vpop.permute.xlu0 %2577  ;;  %v2024_v41 = vpop.permute.xlu1 %2023 }
 0x180   : > { %v2580_v32 = vsel %vm386_vm10, %v2576_v43, %v2578_v27  ;;  %v1874_v35 = vcombine.high %v1873_v21, %v1873_v21  ;;  %v1881_v38 = vrot.slane %v1873_v21, %v3042_v8 }
 0x181   : > { %v2584_v17 = vadd.f32 %v2580_v32, %v4476_v52  ;;  %v2472_v52 = vadd.f32 %v2462_v55, %v2414_v3 }
 0x182   : > { %v1888_v25 = vrot.slane %v1874_v35, %v3042_v8  ;;  %2882 = vst.msk [vmem:[%s3894_s18 + $0x5] ss:$8 sm:$0x3] %vm3841_vm12, %v1881_v38 }
 0x183   : > { %v2655_v24 = vadd.f32 %v2586_v1, %v2584_v17  ;;  %v2022_v10 = vpop.permute.xlu0 %2021 }
 0x184   : > { %v2025_v14 = vsel %vm311_vm11, %v2020_v47, %v2022_v10  ;;  %v2026_v46 = vsel %vm311_vm11, %v2022_v10, %v2024_v41  ;;  %2883 = vst.msk [vmem:[%s3894_s18 + $0x25] ss:$8 sm:$0x3] %vm3841_vm12, %v1888_v25 }
 0x185   : > { %v2713_v55 = vadd.f32 %v2709_v39, %v2655_v24  ;;  %v2029_v34 = vsel %vm3344_vm1, %v2025_v14, 0.0  ;;  %v2030_v53 = vsel %vm3350_vm2, %v2026_v46, 0.0 }
 0x186   : > { %v2065_v29 = vmul.f32 %v2064_v62, %v2029_v34  ;;  %v2305_v54 = vmul.f32 %v2304_v51, %v2029_v34  ;;  %v2545_v43 = vmul.f32 %v2544_v16, %v2029_v34  ;;  %v2066_v36 = vmul.f32 %v2064_v62, %v2030_v53 }
 0x187   : > { %v2306_v44 = vmul.f32 %v2304_v51, %v2030_v53  ;;  %v2546_v22 = vmul.f32 %v2544_v16, %v2030_v53 }
 0x188   : > { %v2234_v26 = vadd.f32 %v2232_v11, %v2065_v29  ;;  %v2474_v13 = vadd.f32 %v2472_v52, %v2305_v54  ;;  %v2235_v40 = vadd.f32 %v2233_v31, %v2066_v36  ;;  %v2714_v23 = vadd.f32 %v2712_v56, %v2545_v43 }
 0x189   : > { %v2475_v12 = vadd.f32 %v2473_v20, %v2306_v44  ;;  %v2715_v15 = vadd.f32 %v2713_v55, %v2546_v22 }
 0x18a   : > { %2964 = vtanh.f32 %v2234_v26 }
 0x18b   : > { %2966 = vtanh.f32 %v2235_v40 }
 0x18c   : > { %2968 = vtanh.f32 %v2474_v13 }
 0x18d   : > { %2970 = vtanh.f32 %v2475_v12 }
 0x18e   : > { %2972 = vtanh.f32 %v2714_v23 }
 0x18f   : > { %2974 = vtanh.f32 %v2715_v15 }
 0x194   : > { %v2965_v62 = vpop.eup %2964 }
 0x195   : > { %v2967_v51 = vpop.eup %2966 }
 0x196   : > { %v2969_v16 = vpop.eup %2968  ;;  %v2240_v4 = vcombine.low %v2965_v62, %v2967_v51 }
 0x197   : > { %v2971_v6 = vpop.eup %2970 }
 0x198   : > { %v2973_v58 = vpop.eup %2972  ;;  %v2247_v2 = vrot.slane %v2240_v4, %v3042_v8  ;;  %v2480_v33 = vcombine.low %v2969_v16, %v2971_v6 }
 0x199   : > { %v2975_v9 = vpop.eup %2974 }
 0x19a   : > { %v2248_v61 = vcombine.high %v2247_v2, %v2247_v2  ;;  %v2255_v0 = vrot.slane %v2247_v2, %v3042_v8  ;;  %v2487_v50 = vrot.slane %v2480_v33, %v3042_v8  ;;  %v2720_v47 = vcombine.low %v2973_v58, %v2975_v9 }
 0x19c   : > { %v2262_v19 = vrot.slane %v2248_v61, %v3042_v8  ;;  %2893 = vst.msk [vmem:[%s3894_s18 + $0x6] ss:$8 sm:$0x3] %vm3841_vm12, %v2255_v0  ;;  %v2488_v5 = vcombine.high %v2487_v50, %v2487_v50  ;;  %v2495_v37 = vrot.slane %v2487_v50, %v3042_v8  ;;  %v2727_v63 = vrot.slane %v2720_v47, %v3042_v8 }
 0x19e   : > { %2894 = vst.msk [vmem:[%s3894_s18 + $0x26] ss:$8 sm:$0x3] %vm3841_vm12, %v2262_v19  ;;  %v2502_v3 = vrot.slane %v2488_v5, %v3042_v8  ;;  %2904 = vst.msk [vmem:[%s3894_s18 + $0x7] ss:$8 sm:$0x3] %vm3841_vm12, %v2495_v37  ;;  %v2728_v7 = vcombine.high %v2727_v63, %v2727_v63  ;;  %v2735_v27 = vrot.slane %v2727_v63, %v3042_v8 }
 0x1a0   : > { %2905 = vst.msk [vmem:[%s3894_s18 + $0x27] ss:$8 sm:$0x3] %vm3841_vm12, %v2502_v3  ;;  %v2742_v57 = vrot.slane %v2728_v7, %v3042_v8  ;;  %2915 = vst.msk [vmem:[%s3894_s18 + $0x10] ss:$8 sm:$0x3] %vm3841_vm12, %v2735_v27 }
 0x1a2   : > { %2916 = vst.msk [vmem:[%s3894_s18 + $0x30] ss:$8 sm:$0x3] %vm3841_vm12, %v2742_v57 }
 0x1a3 PF: > { %s18_s14 = sadd.s32 1, %s2996_s14  }
 0x1a4   : > { %p15_p9 = scmp.ge.s32.totalorder %s18_s14, 4  }
 0x1a6   :  { %17 = sbr.rel (!%p15_p9) target bundleno = 16 (0x10), region = 82 }

</bundles_post_ra>
